<compile_context>
chip_gen: v6e
topology: v6e:2x2x1
jax: 0.10.0
libtpu: 0.0.40
codegen_flags: <defaults>
</compile_context>

<pallas_src>
import functools

import jax
import jax.numpy as jnp
from jax.experimental import pallas as pl
from jax.experimental.pallas import tpu as pltpu

EPS = 1e-5                       # nn.BatchNorm2d default eps
TM_TARGET = 512                  # pixel rows (N*H*W) per tile
TK_TARGET = 512                  # contraction (9*Cin) per tile
VMEM_LIMIT = 32 * 1024 * 1024    # sized for v7x (64 MiB physical / 32 MiB scoped)


def _ceil_to(x, m):
    return (x + m - 1) // m * m


def _pick_tile(m, target):
    t = min(target, _ceil_to(m, 8))
    return t, _ceil_to(m, t)


# ----------------------------- Pallas kernels ------------------------------ #

def _matmul_bias_kernel(x_ref, w_ref, b_ref, o_ref):
    # x: (tm, K) bf16, w: (K, Ncol) bf16, b: (1, Ncol) f32 -> o: (tm, Ncol) f32
    o_ref[...] = (
        jnp.dot(x_ref[...], w_ref[...], preferred_element_type=jnp.float32)
        + b_ref[...]
    )


def _conv_mm_stats_kernel(x_ref, w_ref, b_ref, y_ref, st_ref, acc_ref, *,
                          m_total, tm):
    """One (M-tile, K-tile) step of conv-as-matmul.

    Accumulates x @ w into an f32 VMEM accumulator over the K grid axis; on the
    last K step adds the bias, writes the bf16 activation tile and emits the
    per-M-tile partial sum / sum-of-squares needed for training-mode BatchNorm.
    """
    k = pl.program_id(1)

    @pl.when(k == 0)
    def _init():
        acc_ref[...] = jnp.zeros_like(acc_ref)

    acc_ref[...] += jnp.dot(x_ref[...], w_ref[...],
                            preferred_element_type=jnp.float32)

    @pl.when(k == pl.num_programs(1) - 1)
    def _finalize():
        acc = acc_ref[...] + b_ref[...]
        y_ref[...] = acc.astype(y_ref.dtype)
        if m_total % tm == 0:
            acc_m = acc
        else:
            # mask zero-padded rows (their conv output is `bias`, not 0)
            row = (jax.lax.broadcasted_iota(jnp.int32, acc.shape, 0)
                   + pl.program_id(0) * tm)
            acc_m = jnp.where(row < m_total, acc, 0.0)
        s = jnp.sum(acc_m, axis=0, keepdims=True)
        sq = jnp.sum(acc_m * acc, axis=0, keepdims=True)
        st_ref[...] = jnp.concatenate([s, sq], axis=0)[None, :, :]


def _bn_relu_kernel(x_ref, a_ref, b_ref, o_ref):
    # y = relu(x * a + b), a = gamma/sqrt(var+eps), b = beta - mean*a  (f32 epilogue)
    o_ref[...] = jnp.maximum(
        x_ref[...].astype(jnp.float32) * a_ref[...] + b_ref[...], 0.0)


# ------------------------------ kernel wrappers ----------------------------- #

def _upconv2x2(x_nchw, up_w, up_b):
    """ConvTranspose2d(C -> Co, k=2, s=2); returns NHWC (N, 2H, 2W, Co)."""
    N, C, H, W = x_nchw.shape
    Co = up_w.shape[1]
    co_p = _ceil_to(Co, 32)                 # 4*co_p is a multiple of 128 (lane-dense out)
    ncol = 4 * co_p

    x2d = jnp.transpose(x_nchw, (0, 2, 3, 1)).reshape(N * H * W, C)
    x2d = x2d.astype(jnp.bfloat16)
    # torch ConvTranspose2d weight (Cin, Cout, kH, kW) -> (cin, kh, kw, cout_pad)
    w = jnp.transpose(up_w, (0, 2, 3, 1))
    w = jnp.pad(w, ((0, 0), (0, 0), (0, 0), (0, co_p - Co)))
    w2d = w.reshape(C, ncol).astype(jnp.bfloat16)
    b2d = jnp.tile(jnp.pad(up_b, (0, co_p - Co)), 4).reshape(1, ncol)
    b2d = b2d.astype(jnp.float32)

    M = N * H * W
    tm, m_pad = _pick_tile(M, TM_TARGET)
    x2d = jnp.pad(x2d, ((0, m_pad - M), (0, 0)))
    m_tiles = m_pad // tm

    up2d = pl.pallas_call(
        _matmul_bias_kernel,
        grid=(m_tiles,),
        in_specs=[pl.BlockSpec((tm, C), lambda i: (i, 0)),
                  pl.BlockSpec((C, ncol), lambda i: (0, 0)),
                  pl.BlockSpec((1, ncol), lambda i: (0, 0))],
        out_specs=pl.BlockSpec((tm, ncol), lambda i: (i, 0)),
        out_shape=jax.ShapeDtypeStruct((m_pad, ncol), jnp.float32),
        compiler_params=pltpu.CompilerParams(
            dimension_semantics=("parallel",), vmem_limit_bytes=VMEM_LIMIT),
    )(x2d, w2d, b2d)

    up = up2d[:M].reshape(N, H, W, 2, 2, co_p)[..., :Co]
    # TODO(synk): fuse this 2x2 pixel scatter into the up-conv output BlockSpec to avoid
    # one wrapper-side transpose (an extra HBM round trip of the upsampled activation).
    up = jnp.transpose(up, (0, 1, 3, 2, 4, 5)).reshape(N, 2 * H, 2 * W, Co)
    return up


def _im2col_3x3(sources):
    """3x3/pad-1 im2col over the channel-concat of NHWC `sources` (concat never materialized)."""
    N, H, W, _ = sources[0].shape
    padded = [jnp.pad(s.astype(jnp.bfloat16), ((0, 0), (1, 1), (1, 1), (0, 0)))
              for s in sources]
    # columns ordered (kh, kw, cin), cin = concat of the sources' channels
    cols = jnp.concatenate(
        [p[:, kh:kh + H, kw:kw + W, :]
         for kh in range(3) for kw in range(3) for p in padded], axis=-1)
    # TODO(synk): this still materializes a 9x patch matrix in HBM; building the patches
    # in-kernel from a haloed spatial tile would cut conv HBM reads ~9x.
    return cols.reshape(N * H * W, -1), (N, H, W)


def _conv3_bn_relu(sources, w_oihw, bias, gamma, beta):
    """Conv2d(k=3, pad=1) + BatchNorm2d (training batch stats) + ReLU, NHWC in/out.

    `sources`: list of NHWC tensors whose channel concatenation is the conv input.
    """
    cout, cin = w_oihw.shape[0], w_oihw.shape[1]
    x2d, (N, H, W) = _im2col_3x3(sources)
    w2d = jnp.transpose(w_oihw, (2, 3, 1, 0)).reshape(9 * cin, cout)
    w2d = w2d.astype(jnp.bfloat16)

    M, K = x2d.shape
    cout_p = _ceil_to(cout, 128)            # lane-dense output columns
    tm, m_pad = _pick_tile(M, TM_TARGET)
    if K <= TK_TARGET:
        tk, k_pad = K, K                    # single full-K tile, no K padding/traffic blow-up
    else:
        tk, k_pad = TK_TARGET, _ceil_to(K, TK_TARGET)

    x2d = jnp.pad(x2d, ((0, m_pad - M), (0, k_pad - K)))
    w2d = jnp.pad(w2d, ((0, k_pad - K), (0, cout_p - cout)))
    b_p = jnp.pad(bias.astype(jnp.float32), (0, cout_p - cout))
    g_p = jnp.pad(gamma.astype(jnp.float32), (0, cout_p - cout))
    be_p = jnp.pad(beta.astype(jnp.float32), (0, cout_p - cout))

    m_tiles, k_tiles = m_pad // tm, k_pad // tk

    # Pass 1: tiled conv matmul (+bias) and per-M-tile BN partial statistics.
    conv2d, stats = pl.pallas_call(
        functools.partial(_conv_mm_stats_kernel, m_total=M, tm=tm),
        grid=(m_tiles, k_tiles),
        in_specs=[pl.BlockSpec((tm, tk), lambda i, k: (i, k)),
                  pl.BlockSpec((tk, cout_p), lambda i, k: (k, 0)),
                  pl.BlockSpec((1, cout_p), lambda i, k: (0, 0))],
        out_specs=[pl.BlockSpec((tm, cout_p), lambda i, k: (i, 0)),
                   pl.BlockSpec((1, 2, cout_p), lambda i, k: (i, 0, 0))],
        out_shape=[jax.ShapeDtypeStruct((m_pad, cout_p), jnp.bfloat16),
                   jax.ShapeDtypeStruct((m_tiles, 2, cout_p), jnp.float32)],
        scratch_shapes=[pltpu.VMEM((tm, cout_p), jnp.float32)],
        compiler_params=pltpu.CompilerParams(
            dimension_semantics=("parallel", "arbitrary"),
            vmem_limit_bytes=VMEM_LIMIT),
    )(x2d, w2d, b_p.reshape(1, cout_p))

    # Finish BN on the tiny (m_tiles, 2, cout_p) partials; fold mean/var/gamma/beta into a
    # single per-channel scale & shift (f32).  Biased variance = training-mode BatchNorm2d.
    ssum = jnp.sum(stats[:, 0, :], axis=0)
    ssq = jnp.sum(stats[:, 1, :], axis=0)
    mean = ssum / M
    var = jnp.maximum(ssq / M - mean * mean, 0.0)
    scale = g_p * jax.lax.rsqrt(var + EPS)
    shift = be_p - mean * scale
    # TODO(synk): running_mean/running_var buffer updates (training side effect) not reproduced.

    # Pass 2: streaming relu(x*a + b), tiled over M.
    out2d = pl.pallas_call(
        _bn_relu_kernel,
        grid=(m_tiles,),
        in_specs=[pl.BlockSpec((tm, cout_p), lambda i: (i, 0)),
                  pl.BlockSpec((1, cout_p), lambda i: (0, 0)),
                  pl.BlockSpec((1, cout_p), lambda i: (0, 0))],
        out_specs=pl.BlockSpec((tm, cout_p), lambda i: (i, 0)),
        out_shape=jax.ShapeDtypeStruct((m_pad, cout_p), jnp.float32),
        compiler_params=pltpu.CompilerParams(
            dimension_semantics=("parallel",), vmem_limit_bytes=VMEM_LIMIT),
    )(conv2d, scale.reshape(1, cout_p), shift.reshape(1, cout_p))

    return out2d[:M, :cout].reshape(N, H, W, cout)


def decoder_block(x_nchw, y_nchw, params):
    """Pallas implementation of DecoderBlock.forward(x, y). NCHW in, NCHW out."""
    up = _upconv2x2(x_nchw, params['up_w'], params['up_b'])      # (N, 2H, 2W, Co)
    y_nhwc = jnp.transpose(y_nchw, (0, 2, 3, 1))
    # torch.cat((y, up), dim=1) is folded into conv0's im2col (y channels first).
    h = _conv3_bn_relu([y_nhwc, up], params['conv0_w'], params['conv0_b'],
                       params['bn0_g'], params['bn0_b'])
    h = _conv3_bn_relu([h], params['conv1_w'], params['conv1_b'],
                       params['bn1_g'], params['bn1_b'])
    return jnp.transpose(h, (0, 3, 1, 2))                        # back to NCHW


# ------------------------------ pure-JAX reference -------------------------- #

def reference(x, y, params):
    N, C, H, W = x.shape
    Co = C // 2
    up = jnp.einsum('nchw,coab->nohawb', x, params['up_w'])
    up = up.reshape(N, Co, 2 * H, 2 * W) + params['up_b'][None, :, None, None]
    h = jnp.concatenate([y, up], axis=1)
    for i in range(2):
        h = jax.lax.conv_general_dilated(
            h, params[f'conv{i}_w'], window_strides=(1, 1),
            padding=((1, 1), (1, 1)),
            dimension_numbers=('NCHW', 'OIHW', 'NCHW'),
            precision=jax.lax.Precision.HIGHEST,
        ) + params[f'conv{i}_b'][None, :, None, None]
        mean = jnp.mean(h, axis=(0, 2, 3), keepdims=True)
        var = jnp.mean(jnp.square(h - mean), axis=(0, 2, 3), keepdims=True)
        h = (h - mean) * jax.lax.rsqrt(var + EPS)
        h = h * params[f'bn{i}_g'][None, :, None, None] \
              + params[f'bn{i}_b'][None, :, None, None]
        h = jnp.maximum(h, 0.0)
    return h


# ----------------------------------- main ----------------------------------- #

if __name__ == "__main__":
    key = jax.random.PRNGKey(0)
    ks = jax.random.split(key, 12)

    in_channels = 8                 # DecoderBlock(in_channels=8) for a small test
    Co = in_channels // 2
    N, H, W = 2, 16, 16             # x: low-res feature map; y: skip connection

    x = jax.random.normal(ks[0], (N, in_channels, H, W), jnp.float32)
    y = jax.random.normal(ks[1], (N, Co, 2 * H, 2 * W), jnp.float32)

    params = {
        'up_w':   0.1 * jax.random.normal(ks[2], (in_channels, Co, 2, 2), jnp.float32),
        'up_b':   0.1 * jax.random.normal(ks[3], (Co,), jnp.float32),
        'conv0_w': 0.1 * jax.random.normal(ks[4], (Co, in_channels, 3, 3), jnp.float32),
        'conv0_b': 0.1 * jax.random.normal(ks[5], (Co,), jnp.float32),
        'bn0_g':  1.0 + 0.1 * jax.random.normal(ks[6], (Co,), jnp.float32),
        'bn0_b':  0.1 * jax.random.normal(ks[7], (Co,), jnp.float32),
        'conv1_w': 0.1 * jax.random.normal(ks[8], (Co, Co, 3, 3), jnp.float32),
        'conv1_b': 0.1 * jax.random.normal(ks[9], (Co,), jnp.float32),
        'bn1_g':  1.0 + 0.1 * jax.random.normal(ks[10], (Co,), jnp.float32),
        'bn1_b':  0.1 * jax.random.normal(ks[11], (Co,), jnp.float32),
    }

    out = jax.jit(decoder_block)(x, y, params)
    out = jax.block_until_ready(out)

    ref = reference(x, y, params)
    assert out.shape == (N, Co, 2 * H, 2 * W), out.shape
    err = float(jnp.max(jnp.abs(out - ref)))
    # bf16 MXU inputs (f32 accumulation / f32 BN) per perf review -> slightly looser tolerance
    # than the all-f32 HIGHEST version; reference is exact f32.
    assert jnp.allclose(out, ref, atol=5e-2, rtol=5e-2), err

    print("KERNEL_OK")
</pallas_src>

<mosaic_0001>
module attributes {stable_mosaic.version = 11 : i64} {
  func.func @_matmul_bias_kernel(%arg0: i32, %arg1: memref<512x8xbf16, #tpu.memory_space<vmem>>, %arg2: memref<8x128xbf16, #tpu.memory_space<vmem>>, %arg3: memref<1x128xf32, #tpu.memory_space<vmem>>, %arg4: memref<512x128xf32, #tpu.memory_space<vmem>>) attributes {dimension_semantics = [#tpu.dimension_semantics<parallel>], iteration_bounds = array<i64: 1>, scalar_prefetch = 0 : i64, scratch_operands = 0 : i64, tpu.core_type = #tpu.core_type<tc>, window_params = [{transform_indices = @transform_0, window_bounds = array<i64: 512, 8>}, {pipeline_mode = #tpu.pipeline_mode<synchronous>, transform_indices = @transform_1, window_bounds = array<i64: 8, 128>}, {pipeline_mode = #tpu.pipeline_mode<synchronous>, transform_indices = @transform_2, window_bounds = array<i64: 1, 128>}, {transform_indices = @transform_3, window_bounds = array<i64: 512, 128>}]} {
    %c0 = arith.constant 0 : index
    %c0_0 = arith.constant 0 : index
    %0 = vector.load %arg1[%c0, %c0_0] : memref<512x8xbf16, #tpu.memory_space<vmem>>, vector<512x8xbf16>
    %c0_1 = arith.constant 0 : index
    %c0_2 = arith.constant 0 : index
    %1 = vector.load %arg2[%c0_1, %c0_2] : memref<8x128xbf16, #tpu.memory_space<vmem>>, vector<8x128xbf16>
    %cst = arith.constant dense<0.000000e+00> : vector<512x128xf32>
    %2 = tpu.matmul %0, %1, %cst {dimension_numbers = #tpu.dot_dimension_numbers<[1], [0], [0], [1], [0, 0, 1, 1], [], []>} : vector<512x8xbf16>, vector<8x128xbf16>, vector<512x128xf32> -> vector<512x128xf32>
    %c0_3 = arith.constant 0 : index
    %c0_4 = arith.constant 0 : index
    %3 = vector.load %arg3[%c0_3, %c0_4] : memref<1x128xf32, #tpu.memory_space<vmem>>, vector<1x128xf32>
    %4 = vector.broadcast %3 : vector<1x128xf32> to vector<512x128xf32>
    %5 = arith.addf %2, %4 : vector<512x128xf32>
    %c0_5 = arith.constant 0 : index
    %c0_6 = arith.constant 0 : index
    %6 = vector.load %arg4[%c0_5, %c0_6] : memref<512x128xf32, #tpu.memory_space<vmem>>, vector<512x128xf32>
    tpu.vector_store %arg4[%c0_5, %c0_6], %5 {strides = array<i32>} : memref<512x128xf32, #tpu.memory_space<vmem>>, vector<512x128xf32>,
    return
  }
  func.func @transform_0(%arg0: i32) -> (i32, i32) {
    %c0_i32 = arith.constant 0 : i32
    %c0_i32_0 = arith.constant 0 : i32
    return %arg0, %c0_i32 : i32, i32
  }
  func.func @transform_1(%arg0: i32) -> (i32, i32) {
    %c0_i32 = arith.constant 0 : i32
    %c0_i32_0 = arith.constant 0 : i32
    %c0_i32_1 = arith.constant 0 : i32
    return %c0_i32, %c0_i32_0 : i32, i32
  }
  func.func @transform_2(%arg0: i32) -> (i32, i32) {
    %c0_i32 = arith.constant 0 : i32
    %c0_i32_0 = arith.constant 0 : i32
    %c0_i32_1 = arith.constant 0 : i32
    return %c0_i32, %c0_i32_0 : i32, i32
  }
  func.func @transform_3(%arg0: i32) -> (i32, i32) {
    %c0_i32 = arith.constant 0 : i32
    %c0_i32_0 = arith.constant 0 : i32
    return %arg0, %c0_i32 : i32, i32
  }
}

module attributes {stable_mosaic.version = 11 : i64} {
  func.func @_conv_mm_stats_kernel(%arg0: i32, %arg1: i32, %arg2: memref<512x72xbf16, #tpu.memory_space<vmem>>, %arg3: memref<72x128xbf16, #tpu.memory_space<vmem>>, %arg4: memref<1x128xf32, #tpu.memory_space<vmem>>, %arg5: memref<512x128xbf16, #tpu.memory_space<vmem>>, %arg6: memref<1x2x128xf32, #tpu.memory_space<vmem>>, %arg7: memref<512x128xf32, #tpu.memory_space<vmem>>) attributes {dimension_semantics = [#tpu.dimension_semantics<parallel>, #tpu.dimension_semantics<arbitrary>], iteration_bounds = array<i64: 4, 1>, scalar_prefetch = 0 : i64, scratch_operands = 1 : i64, tpu.core_type = #tpu.core_type<tc>, window_params = [{transform_indices = @transform_0, window_bounds = array<i64: 512, 72>}, {transform_indices = @transform_1, window_bounds = array<i64: 72, 128>}, {pipeline_mode = #tpu.pipeline_mode<synchronous>, transform_indices = @transform_2, window_bounds = array<i64: 1, 128>}, {transform_indices = @transform_3, window_bounds = array<i64: 512, 128>}, {transform_indices = @transform_4, window_bounds = array<i64: 1, 2, 128>}]} {
    %c0_i32 = arith.constant 0 : i32
    %0 = arith.cmpi eq, %arg1, %c0_i32 : i32
    %1 = arith.extui %0 : i1 to i32
    %c0_i32_0 = arith.constant 0 : i32
    %2 = arith.cmpi ne, %1, %c0_i32_0 : i32
    scf.if %2 {
      %cst_10 = arith.constant 0.000000e+00 : f32
      %12 = vector.broadcast %cst_10 : f32 to vector<512x128xf32>
      %c0_11 = arith.constant 0 : index
      %c0_12 = arith.constant 0 : index
      %13 = vector.load %arg7[%c0_11, %c0_12] : memref<512x128xf32, #tpu.memory_space<vmem>>, vector<512x128xf32>
      tpu.vector_store %arg7[%c0_11, %c0_12], %12 {strides = array<i32>} : memref<512x128xf32, #tpu.memory_space<vmem>>, vector<512x128xf32>,
    } else {
    }
    %c0 = arith.constant 0 : index
    %c0_1 = arith.constant 0 : index
    %3 = vector.load %arg7[%c0, %c0_1] : memref<512x128xf32, #tpu.memory_space<vmem>>, vector<512x128xf32>
    %c0_2 = arith.constant 0 : index
    %c0_3 = arith.constant 0 : index
    %4 = vector.load %arg2[%c0_2, %c0_3] : memref<512x72xbf16, #tpu.memory_space<vmem>>, vector<512x72xbf16>
    %c0_4 = arith.constant 0 : index
    %c0_5 = arith.constant 0 : index
    %5 = vector.load %arg3[%c0_4, %c0_5] : memref<72x128xbf16, #tpu.memory_space<vmem>>, vector<72x128xbf16>
    %cst = arith.constant dense<0.000000e+00> : vector<512x128xf32>
    %6 = tpu.matmul %4, %5, %cst {dimension_numbers = #tpu.dot_dimension_numbers<[1], [0], [0], [1], [0, 0, 1, 1], [], []>} : vector<512x72xbf16>, vector<72x128xbf16>, vector<512x128xf32> -> vector<512x128xf32>
    %7 = arith.addf %3, %6 : vector<512x128xf32>
    %c0_6 = arith.constant 0 : index
    %c0_7 = arith.constant 0 : index
    %8 = vector.load %arg7[%c0_6, %c0_7] : memref<512x128xf32, #tpu.memory_space<vmem>>, vector<512x128xf32>
    tpu.vector_store %arg7[%c0_6, %c0_7], %7 {strides = array<i32>} : memref<512x128xf32, #tpu.memory_space<vmem>>, vector<512x128xf32>,
    %c0_i32_8 = arith.constant 0 : i32
    %9 = arith.cmpi eq, %arg1, %c0_i32_8 : i32
    %10 = arith.extui %9 : i1 to i32
    %c0_i32_9 = arith.constant 0 : i32
    %11 = arith.cmpi ne, %10, %c0_i32_9 : i32
    scf.if %11 {
      %c0_10 = arith.constant 0 : index
      %c0_11 = arith.constant 0 : index
      %12 = vector.load %arg7[%c0_10, %c0_11] : memref<512x128xf32, #tpu.memory_space<vmem>>, vector<512x128xf32>
      %c0_12 = arith.constant 0 : index
      %c0_13 = arith.constant 0 : index
      %13 = vector.load %arg4[%c0_12, %c0_13] : memref<1x128xf32, #tpu.memory_space<vmem>>, vector<1x128xf32>
      %14 = vector.broadcast %13 : vector<1x128xf32> to vector<512x128xf32>
      %15 = arith.addf %12, %14 : vector<512x128xf32>
      %16 = arith.truncf %15 : vector<512x128xf32> to vector<512x128xbf16>
      %c0_14 = arith.constant 0 : index
      %c0_15 = arith.constant 0 : index
      %17 = vector.load %arg5[%c0_14, %c0_15] : memref<512x128xbf16, #tpu.memory_space<vmem>>, vector<512x128xbf16>
      tpu.vector_store %arg5[%c0_14, %c0_15], %16 {strides = array<i32>} : memref<512x128xbf16, #tpu.memory_space<vmem>>, vector<512x128xbf16>,
      %cst_16 = arith.constant dense<0.000000e+00> : vector<128xf32>
      %18 = vector.multi_reduction <add>, %15, %cst_16 [0] : vector<512x128xf32> to vector<128xf32>
      %19 = vector.shape_cast %18 : vector<128xf32> to vector<1x128xf32>
      %20 = arith.mulf %15, %15 : vector<512x128xf32>
      %cst_17 = arith.constant dense<0.000000e+00> : vector<128xf32>
      %21 = vector.multi_reduction <add>, %20, %cst_17 [0] : vector<512x128xf32> to vector<128xf32>
      %22 = vector.shape_cast %21 : vector<128xf32> to vector<1x128xf32>
      %23 = tpu.concatenate %19, %22 in 0 : vector<1x128xf32>, vector<1x128xf32> -> vector<2x128xf32>
      %24 = vector.shape_cast %23 : vector<2x128xf32> to vector<1x2x128xf32>
      %c0_18 = arith.constant 0 : index
      %c0_19 = arith.constant 0 : index
      %c0_20 = arith.constant 0 : index
      %25 = vector.load %arg6[%c0_18, %c0_19, %c0_20] : memref<1x2x128xf32, #tpu.memory_space<vmem>>, vector<1x2x128xf32>
      tpu.vector_store %arg6[%c0_18, %c0_19, %c0_20], %24 {strides = array<i32>} : memref<1x2x128xf32, #tpu.memory_space<vmem>>, vector<1x2x128xf32>,
    } else {
    }
    return
  }
  func.func @transform_0(%arg0: i32, %arg1: i32) -> (i32, i32) {
    %c0_i32 = arith.constant 0 : i32
    return %arg0, %arg1 : i32, i32
  }
  func.func @transform_1(%arg0: i32, %arg1: i32) -> (i32, i32) {
    %c0_i32 = arith.constant 0 : i32
    %c0_i32_0 = arith.constant 0 : i32
    return %arg1, %c0_i32 : i32, i32
  }
  func.func @transform_2(%arg0: i32, %arg1: i32) -> (i32, i32) {
    %c0_i32 = arith.constant 0 : i32
    %c0_i32_0 = arith.constant 0 : i32
    %c0_i32_1 = arith.constant 0 : i32
    return %c0_i32, %c0_i32_0 : i32, i32
  }
  func.func @transform_3(%arg0: i32, %arg1: i32) -> (i32, i32) {
    %c0_i32 = arith.constant 0 : i32
    %c0_i32_0 = arith.constant 0 : i32
    return %arg0, %c0_i32 : i32, i32
  }
  func.func @transform_4(%arg0: i32, %arg1: i32) -> (i32, i32, i32) {
    %c0_i32 = arith.constant 0 : i32
    %c0_i32_0 = arith.constant 0 : i32
    %c0_i32_1 = arith.constant 0 : i32
    return %arg0, %c0_i32, %c0_i32_0 : i32, i32, i32
  }
}

module attributes {stable_mosaic.version = 11 : i64} {
  func.func @_bn_relu_kernel(%arg0: i32, %arg1: memref<512x128xbf16, #tpu.memory_space<vmem>>, %arg2: memref<1x128xf32, #tpu.memory_space<vmem>>, %arg3: memref<1x128xf32, #tpu.memory_space<vmem>>, %arg4: memref<512x128xf32, #tpu.memory_space<vmem>>) attributes {dimension_semantics = [#tpu.dimension_semantics<parallel>], iteration_bounds = array<i64: 4>, scalar_prefetch = 0 : i64, scratch_operands = 0 : i64, tpu.core_type = #tpu.core_type<tc>, window_params = [{transform_indices = @transform_0, window_bounds = array<i64: 512, 128>}, {pipeline_mode = #tpu.pipeline_mode<synchronous>, transform_indices = @transform_1, window_bounds = array<i64: 1, 128>}, {pipeline_mode = #tpu.pipeline_mode<synchronous>, transform_indices = @transform_2, window_bounds = array<i64: 1, 128>}, {transform_indices = @transform_3, window_bounds = array<i64: 512, 128>}]} {
    %c0 = arith.constant 0 : index
    %c0_0 = arith.constant 0 : index
    %0 = vector.load %arg1[%c0, %c0_0] : memref<512x128xbf16, #tpu.memory_space<vmem>>, vector<512x128xbf16>
    %1 = arith.extf %0 : vector<512x128xbf16> to vector<512x128xf32>
    %c0_1 = arith.constant 0 : index
    %c0_2 = arith.constant 0 : index
    %2 = vector.load %arg2[%c0_1, %c0_2] : memref<1x128xf32, #tpu.memory_space<vmem>>, vector<1x128xf32>
    %3 = vector.broadcast %2 : vector<1x128xf32> to vector<512x128xf32>
    %4 = arith.mulf %1, %3 : vector<512x128xf32>
    %c0_3 = arith.constant 0 : index
    %c0_4 = arith.constant 0 : index
    %5 = vector.load %arg3[%c0_3, %c0_4] : memref<1x128xf32, #tpu.memory_space<vmem>>, vector<1x128xf32>
    %6 = vector.broadcast %5 : vector<1x128xf32> to vector<512x128xf32>
    %7 = arith.addf %4, %6 : vector<512x128xf32>
    %cst = arith.constant 0.000000e+00 : f32
    %8 = vector.broadcast %cst : f32 to vector<512x128xf32>
    %9 = arith.maximumf %7, %8 : vector<512x128xf32>
    %c0_5 = arith.constant 0 : index
    %c0_6 = arith.constant 0 : index
    %10 = vector.load %arg4[%c0_5, %c0_6] : memref<512x128xf32, #tpu.memory_space<vmem>>, vector<512x128xf32>
    tpu.vector_store %arg4[%c0_5, %c0_6], %9 {strides = array<i32>} : memref<512x128xf32, #tpu.memory_space<vmem>>, vector<512x128xf32>,
    return
  }
  func.func @transform_0(%arg0: i32) -> (i32, i32) {
    %c0_i32 = arith.constant 0 : i32
    %c0_i32_0 = arith.constant 0 : i32
    return %arg0, %c0_i32 : i32, i32
  }
  func.func @transform_1(%arg0: i32) -> (i32, i32) {
    %c0_i32 = arith.constant 0 : i32
    %c0_i32_0 = arith.constant 0 : i32
    %c0_i32_1 = arith.constant 0 : i32
    return %c0_i32, %c0_i32_0 : i32, i32
  }
  func.func @transform_2(%arg0: i32) -> (i32, i32) {
    %c0_i32 = arith.constant 0 : i32
    %c0_i32_0 = arith.constant 0 : i32
    %c0_i32_1 = arith.constant 0 : i32
    return %c0_i32, %c0_i32_0 : i32, i32
  }
  func.func @transform_3(%arg0: i32) -> (i32, i32) {
    %c0_i32 = arith.constant 0 : i32
    %c0_i32_0 = arith.constant 0 : i32
    return %arg0, %c0_i32 : i32, i32
  }
}

module attributes {stable_mosaic.version = 11 : i64} {
  func.func @_conv_mm_stats_kernel(%arg0: i32, %arg1: i32, %arg2: memref<512x36xbf16, #tpu.memory_space<vmem>>, %arg3: memref<36x128xbf16, #tpu.memory_space<vmem>>, %arg4: memref<1x128xf32, #tpu.memory_space<vmem>>, %arg5: memref<512x128xbf16, #tpu.memory_space<vmem>>, %arg6: memref<1x2x128xf32, #tpu.memory_space<vmem>>, %arg7: memref<512x128xf32, #tpu.memory_space<vmem>>) attributes {dimension_semantics = [#tpu.dimension_semantics<parallel>, #tpu.dimension_semantics<arbitrary>], iteration_bounds = array<i64: 4, 1>, scalar_prefetch = 0 : i64, scratch_operands = 1 : i64, tpu.core_type = #tpu.core_type<tc>, window_params = [{transform_indices = @transform_0, window_bounds = array<i64: 512, 36>}, {transform_indices = @transform_1, window_bounds = array<i64: 36, 128>}, {pipeline_mode = #tpu.pipeline_mode<synchronous>, transform_indices = @transform_2, window_bounds = array<i64: 1, 128>}, {transform_indices = @transform_3, window_bounds = array<i64: 512, 128>}, {transform_indices = @transform_4, window_bounds = array<i64: 1, 2, 128>}]} {
    %c0_i32 = arith.constant 0 : i32
    %0 = arith.cmpi eq, %arg1, %c0_i32 : i32
    %1 = arith.extui %0 : i1 to i32
    %c0_i32_0 = arith.constant 0 : i32
    %2 = arith.cmpi ne, %1, %c0_i32_0 : i32
    scf.if %2 {
      %cst_10 = arith.constant 0.000000e+00 : f32
      %12 = vector.broadcast %cst_10 : f32 to vector<512x128xf32>
      %c0_11 = arith.constant 0 : index
      %c0_12 = arith.constant 0 : index
      %13 = vector.load %arg7[%c0_11, %c0_12] : memref<512x128xf32, #tpu.memory_space<vmem>>, vector<512x128xf32>
      tpu.vector_store %arg7[%c0_11, %c0_12], %12 {strides = array<i32>} : memref<512x128xf32, #tpu.memory_space<vmem>>, vector<512x128xf32>,
    } else {
    }
    %c0 = arith.constant 0 : index
    %c0_1 = arith.constant 0 : index
    %3 = vector.load %arg7[%c0, %c0_1] : memref<512x128xf32, #tpu.memory_space<vmem>>, vector<512x128xf32>
    %c0_2 = arith.constant 0 : index
    %c0_3 = arith.constant 0 : index
    %4 = vector.load %arg2[%c0_2, %c0_3] : memref<512x36xbf16, #tpu.memory_space<vmem>>, vector<512x36xbf16>
    %c0_4 = arith.constant 0 : index
    %c0_5 = arith.constant 0 : index
    %5 = vector.load %arg3[%c0_4, %c0_5] : memref<36x128xbf16, #tpu.memory_space<vmem>>, vector<36x128xbf16>
    %cst = arith.constant dense<0.000000e+00> : vector<512x128xf32>
    %6 = tpu.matmul %4, %5, %cst {dimension_numbers = #tpu.dot_dimension_numbers<[1], [0], [0], [1], [0, 0, 1, 1], [], []>} : vector<512x36xbf16>, vector<36x128xbf16>, vector<512x128xf32> -> vector<512x128xf32>
    %7 = arith.addf %3, %6 : vector<512x128xf32>
    %c0_6 = arith.constant 0 : index
    %c0_7 = arith.constant 0 : index
    %8 = vector.load %arg7[%c0_6, %c0_7] : memref<512x128xf32, #tpu.memory_space<vmem>>, vector<512x128xf32>
    tpu.vector_store %arg7[%c0_6, %c0_7], %7 {strides = array<i32>} : memref<512x128xf32, #tpu.memory_space<vmem>>, vector<512x128xf32>,
    %c0_i32_8 = arith.constant 0 : i32
    %9 = arith.cmpi eq, %arg1, %c0_i32_8 : i32
    %10 = arith.extui %9 : i1 to i32
    %c0_i32_9 = arith.constant 0 : i32
    %11 = arith.cmpi ne, %10, %c0_i32_9 : i32
    scf.if %11 {
      %c0_10 = arith.constant 0 : index
      %c0_11 = arith.constant 0 : index
      %12 = vector.load %arg7[%c0_10, %c0_11] : memref<512x128xf32, #tpu.memory_space<vmem>>, vector<512x128xf32>
      %c0_12 = arith.constant 0 : index
      %c0_13 = arith.constant 0 : index
      %13 = vector.load %arg4[%c0_12, %c0_13] : memref<1x128xf32, #tpu.memory_space<vmem>>, vector<1x128xf32>
      %14 = vector.broadcast %13 : vector<1x128xf32> to vector<512x128xf32>
      %15 = arith.addf %12, %14 : vector<512x128xf32>
      %16 = arith.truncf %15 : vector<512x128xf32> to vector<512x128xbf16>
      %c0_14 = arith.constant 0 : index
      %c0_15 = arith.constant 0 : index
      %17 = vector.load %arg5[%c0_14, %c0_15] : memref<512x128xbf16, #tpu.memory_space<vmem>>, vector<512x128xbf16>
      tpu.vector_store %arg5[%c0_14, %c0_15], %16 {strides = array<i32>} : memref<512x128xbf16, #tpu.memory_space<vmem>>, vector<512x128xbf16>,
      %cst_16 = arith.constant dense<0.000000e+00> : vector<128xf32>
      %18 = vector.multi_reduction <add>, %15, %cst_16 [0] : vector<512x128xf32> to vector<128xf32>
      %19 = vector.shape_cast %18 : vector<128xf32> to vector<1x128xf32>
      %20 = arith.mulf %15, %15 : vector<512x128xf32>
      %cst_17 = arith.constant dense<0.000000e+00> : vector<128xf32>
      %21 = vector.multi_reduction <add>, %20, %cst_17 [0] : vector<512x128xf32> to vector<128xf32>
      %22 = vector.shape_cast %21 : vector<128xf32> to vector<1x128xf32>
      %23 = tpu.concatenate %19, %22 in 0 : vector<1x128xf32>, vector<1x128xf32> -> vector<2x128xf32>
      %24 = vector.shape_cast %23 : vector<2x128xf32> to vector<1x2x128xf32>
      %c0_18 = arith.constant 0 : index
      %c0_19 = arith.constant 0 : index
      %c0_20 = arith.constant 0 : index
      %25 = vector.load %arg6[%c0_18, %c0_19, %c0_20] : memref<1x2x128xf32, #tpu.memory_space<vmem>>, vector<1x2x128xf32>
      tpu.vector_store %arg6[%c0_18, %c0_19, %c0_20], %24 {strides = array<i32>} : memref<1x2x128xf32, #tpu.memory_space<vmem>>, vector<1x2x128xf32>,
    } else {
    }
    return
  }
  func.func @transform_0(%arg0: i32, %arg1: i32) -> (i32, i32) {
    %c0_i32 = arith.constant 0 : i32
    return %arg0, %arg1 : i32, i32
  }
  func.func @transform_1(%arg0: i32, %arg1: i32) -> (i32, i32) {
    %c0_i32 = arith.constant 0 : i32
    %c0_i32_0 = arith.constant 0 : i32
    return %arg1, %c0_i32 : i32, i32
  }
  func.func @transform_2(%arg0: i32, %arg1: i32) -> (i32, i32) {
    %c0_i32 = arith.constant 0 : i32
    %c0_i32_0 = arith.constant 0 : i32
    %c0_i32_1 = arith.constant 0 : i32
    return %c0_i32, %c0_i32_0 : i32, i32
  }
  func.func @transform_3(%arg0: i32, %arg1: i32) -> (i32, i32) {
    %c0_i32 = arith.constant 0 : i32
    %c0_i32_0 = arith.constant 0 : i32
    return %arg0, %c0_i32 : i32, i32
  }
  func.func @transform_4(%arg0: i32, %arg1: i32) -> (i32, i32, i32) {
    %c0_i32 = arith.constant 0 : i32
    %c0_i32_0 = arith.constant 0 : i32
    %c0_i32_1 = arith.constant 0 : i32
    return %arg0, %c0_i32, %c0_i32_0 : i32, i32, i32
  }
}

</mosaic_0001>

<bundles_post_ra>
// kernel: tile.8
= control target key start
LH: loop header
LB: loop body
LE: loop exit
PB: predicated region body
PF: predicated region fallthrough
CT: control target
= control target key end

     0   :  { %s22_s0 = inlined_call_operand.vmem [shape: f32[32], index: 0, kind: input, shape index: {}]   ;;  %s23_s1 = inlined_call_operand.vmem [shape: f32[4,32], index: 1, kind: output, shape index: {}]  }
   0x1   :  { %v4_v0 = vld [vmem:[%s22_s0] ss:$0 sm:$0xff] }
   0x2   :  { %5 = vst [vmem:[%s23_s1] sm:$0xf] %v4_v0 }

// kernel: tile.9
= control target key start
LH: loop header
LB: loop body
LE: loop exit
PB: predicated region body
PF: predicated region fallthrough
CT: control target
= control target key end

     0   :  { %vm8_vm0 = vcmask 261120   ;;  %s40_s8 = smov 32   ;;  %s41_s9 = smov 64   ;;  %vm14_vm1 = vcmask 1048320   ;;  %vm20_vm2 = vcmask 785920   ;;  %vm26_vm3 = vcmask 523520   ;;  %s58_s0 = inlined_call_operand.vmem [shape: f32[4,32], index: 0, kind: input, shape index: {}]   ;;  %s59_s1 = inlined_call_operand.vmem [shape: f32[1,128], index: 1, kind: output, shape index: {}]  }
   0x1   :  { %v5_v0 = vld [vmem:[%s58_s0] sm:$0xf]  ;;  %s39_s0 = smov 96  }
   0x2   :  { %6 = vst [vmem:[#allocation1] sm:$0xf] %v5_v0 }
   0x9   :  { %v11_v1 = vld [vmem:[#allocation1 + $0x3] sm:$0x1]   ;;  %v23_v2 = vld [vmem:[#allocation1 + $0x1] sm:$0x1]   ;;  %v7_v3 = vld [vmem:[#allocation1] sm:$0x1]  }
   0xa   :  { %12 = vrot.lane.b32.xlu0 %v11_v1, %s39_s0  ;;  %24 = vrot.lane.b32.xlu1 %v23_v2, %s40_s8  ;;  %v17_v4 = vld [vmem:[#allocation1 + $0x2] sm:$0x1]   ;;  %9 = vst.msk [vmem:[#allocation0] sm:$0x1] %vm8_vm0, %v7_v3  }
   0xe   :  { %18 = vrot.lane.b32.xlu0 %v17_v4, %s41_s9 }
  0x7c   :  { %v13_v5 = vpop.permute.xlu0 %12   ;;  %v25_v6 = vpop.permute.xlu1 %24  }
  0x7d   :  { %15 = vst.msk [vmem:[#allocation0] sm:$0x1] %vm14_vm1, %v13_v5  }
  0x80   :  { %v19_v7 = vpop.permute.xlu0 %18  }
  0x81   :  { %21 = vst.msk [vmem:[#allocation0] sm:$0x1] %vm20_vm2, %v19_v7  }
  0x82   :  { %27 = vst.msk [vmem:[#allocation0] sm:$0x1] %vm26_vm3, %v25_v6  }
  0x89   :  { %v32_v8 = vld [vmem:[#allocation0] sm:$0x1] }
  0x8a   :  { %35 = vst [vmem:[%s59_s1] sm:$0x1] %v32_v8 }

// kernel: decoder_block.5
= control target key start
LH: loop header
LB: loop body
LE: loop exit
PB: predicated region body
PF: predicated region fallthrough
CT: control target
= control target key end

     0   :  { %vm344_vm0 = vcmask 1043456   ;;  %vm247_vm1 = vcmask 64512   ;;  %s1317_s1 = inlined_call_operand.vmem [shape: bf16[8,128], index: 1, kind: input, shape index: {}]   ;;  %s1318_s0 = inlined_call_operand.vmem [shape: bf16[512,8], index: 0, kind: input, shape index: {}]   ;;  %s1319_s2 = inlined_call_operand.vmem [shape: f32[1,128], index: 2, kind: input, shape index: {}]   ;;  %s1320_s3 = inlined_call_operand.vmem [shape: f32[512,128], index: 3, kind: output, shape index: {}]  }
   0x1   :  { %v79_v0 = vld [vmem:[%s1317_s1] sm:$0xf]  ;;  %v875_v4 = vld [vmem:[%s1318_s0 + $0x8] sm:$0xff]   ;;  %v877_v6 = vld [vmem:[%s1318_s0 + $0x10] sm:$0xff]  }
   0x2   :  { %871 = vmatprep.subr.msk.bf16.mxu0 %vm344_vm0, %v79_v0  ;;  %872 = vmatprep.subr.msk.bf16.mxu1 %vm344_vm0, %v79_v0  ;;  %v346_v1 = vsel %vm344_vm0, %v79_v0, 0  ;;  %v873_v2 = vld [vmem:[%s1318_s0] sm:$0xff]   ;;  %v876_v5 = vld [vmem:[%s1318_s0 + $0x88] sm:$0xff]   ;;  %v878_v7 = vld [vmem:[%s1318_s0 + $0x90] sm:$0xff]  }
   0x3   :  { %804 = vmatpush3.bf16.msra.mxu0 %v346_v1  ;;  %870 = vmatpush3.bf16.msra.mxu1 %v346_v1  ;;  %v874_v3 = vld [vmem:[%s1318_s0 + $0x80] sm:$0xff]   ;;  %v879_v8 = vld [vmem:[%s1318_s0 + $0x18] sm:$0xff]   ;;  %v883_v12 = vld [vmem:[%s1318_s0 + $0x28] sm:$0xff]  }
   0x4   :  { %805 = vmatprep.mubr.msk.bf16.mxu0 %vm247_vm1, %v873_v2  ;;  %837 = vmatprep.mubr.msk.bf16.mxu1 %vm247_vm1, %v874_v3  ;;  %v880_v9 = vld [vmem:[%s1318_s0 + $0x98] sm:$0xff]   ;;  %v881_v10 = vld [vmem:[%s1318_s0 + $0x20] sm:$0xff]   ;;  %v884_v13 = vld [vmem:[%s1318_s0 + $0xa8] sm:$0xff]  }
   0x5   :  { %v882_v11 = vld [vmem:[%s1318_s0 + $0xa0] sm:$0xff]   ;;  %v885_v14 = vld [vmem:[%s1318_s0 + $0x30] sm:$0xff]   ;;  %v887_v16 = vld [vmem:[%s1318_s0 + $0x38] sm:$0xff]  }
   0x6   :  { %806 = vmatmul.mubr.msk.bf16.vlgmr.msra.gmra.mxu0 %vm247_vm1, %v875_v4  ;;  %838 = vmatmul.mubr.msk.bf16.vlgmr.msra.gmra.mxu1 %vm247_vm1, %v876_v5  ;;  %v886_v15 = vld [vmem:[%s1318_s0 + $0xb0] sm:$0xff]   ;;  %v888_v17 = vld [vmem:[%s1318_s0 + $0xb8] sm:$0xff]   ;;  %v889_v18 = vld [vmem:[%s1318_s0 + $0x40] sm:$0xff]  }
   0x7   :  { %809 = vmatprep.mubr.msk.bf16.mxu0 %vm247_vm1, %v877_v6  ;;  %841 = vmatprep.mubr.msk.bf16.mxu1 %vm247_vm1, %v878_v7  ;;  %v890_v19 = vld [vmem:[%s1318_s0 + $0xc0] sm:$0xff]   ;;  %v891_v20 = vld [vmem:[%s1318_s0 + $0x48] sm:$0xff]   ;;  %v893_v22 = vld [vmem:[%s1318_s0 + $0x50] sm:$0xff]  }
   0x8   :  { %v892_v21 = vld [vmem:[%s1318_s0 + $0xc8] sm:$0xff]   ;;  %v894_v23 = vld [vmem:[%s1318_s0 + $0xd0] sm:$0xff]   ;;  %v895_v24 = vld [vmem:[%s1318_s0 + $0x58] sm:$0xff]  }
   0x9   :  { %v896_v25 = vld [vmem:[%s1318_s0 + $0xd8] sm:$0xff]   ;;  %v897_v26 = vld [vmem:[%s1318_s0 + $0x60] sm:$0xff]   ;;  %v899_v28 = vld [vmem:[%s1318_s0 + $0x68] sm:$0xff]  }
   0xa   :  { %v898_v27 = vld [vmem:[%s1318_s0 + $0xe0] sm:$0xff]   ;;  %v900_v29 = vld [vmem:[%s1318_s0 + $0xe8] sm:$0xff]   ;;  %v901_v30 = vld [vmem:[%s1318_s0 + $0x70] sm:$0xff]  }
   0xb   :  { %v902_v31 = vld [vmem:[%s1318_s0 + $0xf0] sm:$0xff]   ;;  %v903_v32 = vld [vmem:[%s1318_s0 + $0x78] sm:$0xff]   ;;  %v1059_v34 = vld [vmem:[%s1319_s2] ss:$0 sm:$0xff] }
   0xc   :  { %v904_v33 = vld [vmem:[%s1318_s0 + $0xf8] sm:$0xff]  }
   0xe   :  { %810 = vmatmul.mubr.msk.bf16.gmra.mxu0 %vm247_vm1, %v879_v8  ;;  %842 = vmatmul.mubr.msk.bf16.gmra.mxu1 %vm247_vm1, %v880_v9 }
   0xf   :  { %813 = vmatprep.mubr.msk.bf16.mxu0 %vm247_vm1, %v881_v10  ;;  %845 = vmatprep.mubr.msk.bf16.mxu1 %vm247_vm1, %v882_v11 }
  0x16   :  { %814 = vmatmul.mubr.msk.bf16.gmra.mxu0 %vm247_vm1, %v883_v12  ;;  %846 = vmatmul.mubr.msk.bf16.gmra.mxu1 %vm247_vm1, %v884_v13 }
  0x17   :  { %817 = vmatprep.mubr.msk.bf16.mxu0 %vm247_vm1, %v885_v14  ;;  %849 = vmatprep.mubr.msk.bf16.mxu1 %vm247_vm1, %v886_v15 }
  0x1e   :  { %818 = vmatmul.mubr.msk.bf16.gmra.mxu0 %vm247_vm1, %v887_v16  ;;  %850 = vmatmul.mubr.msk.bf16.gmra.mxu1 %vm247_vm1, %v888_v17 }
  0x1f   :  { %821 = vmatprep.mubr.msk.bf16.mxu0 %vm247_vm1, %v889_v18  ;;  %853 = vmatprep.mubr.msk.bf16.mxu1 %vm247_vm1, %v890_v19 }
  0x26   :  { %822 = vmatmul.mubr.msk.bf16.gmra.mxu0 %vm247_vm1, %v891_v20  ;;  %854 = vmatmul.mubr.msk.bf16.gmra.mxu1 %vm247_vm1, %v892_v21 }
  0x27   :  { %825 = vmatprep.mubr.msk.bf16.mxu0 %vm247_vm1, %v893_v22  ;;  %857 = vmatprep.mubr.msk.bf16.mxu1 %vm247_vm1, %v894_v23 }
  0x2e   :  { %826 = vmatmul.mubr.msk.bf16.gmra.mxu0 %vm247_vm1, %v895_v24  ;;  %858 = vmatmul.mubr.msk.bf16.gmra.mxu1 %vm247_vm1, %v896_v25 }
  0x2f   :  { %829 = vmatprep.mubr.msk.bf16.mxu0 %vm247_vm1, %v897_v26  ;;  %861 = vmatprep.mubr.msk.bf16.mxu1 %vm247_vm1, %v898_v27 }
  0x36   :  { %830 = vmatmul.mubr.msk.bf16.gmra.mxu0 %vm247_vm1, %v899_v28  ;;  %862 = vmatmul.mubr.msk.bf16.gmra.mxu1 %vm247_vm1, %v900_v29 }
  0x37   :  { %833 = vmatprep.mubr.msk.bf16.mxu0 %vm247_vm1, %v901_v30  ;;  %865 = vmatprep.mubr.msk.bf16.mxu1 %vm247_vm1, %v902_v31 }
  0x3e   :  { %834 = vmatmul.mubr.msk.bf16.gmra.mxu0 %vm247_vm1, %v903_v32  ;;  %866 = vmatmul.mubr.msk.bf16.gmra.mxu1 %vm247_vm1, %v904_v33 }
  0xc6   :  { %v807_v35 = vpop.f32.mrf.mxu0  ;;  %v839_v37 = vpop.f32.mrf.mxu1 }
  0xc7   :  { %v391_v36 = vadd.f32 %v807_v35, %v1059_v34  ;;  %v519_v38 = vadd.f32 %v839_v37, %v1059_v34 }
  0xc8   :  { %v382_v39 = vpop.f32.mrf.mxu0  ;;  %v510_v41 = vpop.f32.mrf.mxu1 }
  0xc9   :  { %639 = vst [vmem:[%s1320_s3 + $0x10] sm:$0xff] %v391_v36  ;;  %v383_v40 = vadd.f32 %v1059_v34, %v382_v39  ;;  %671 = vst [vmem:[%s1320_s3 + $0x110] sm:$0xff] %v519_v38  ;;  %v511_v42 = vadd.f32 %v1059_v34, %v510_v41 }
  0xca   :  { %v808_v43 = vpop.f32.mrf.mxu0  ;;  %v840_v45 = vpop.f32.mrf.mxu1 }
  0xcb   :  { %637 = vst [vmem:[%s1320_s3] sm:$0xff] %v383_v40  ;;  %v394_v44 = vadd.f32 %v808_v43, %v1059_v34  ;;  %669 = vst [vmem:[%s1320_s3 + $0x100] sm:$0xff] %v511_v42  ;;  %v522_v46 = vadd.f32 %v840_v45, %v1059_v34 }
  0xcc   :  { %v385_v47 = vpop.f32.mrf.mxu0  ;;  %v513_v49 = vpop.f32.mrf.mxu1 }
  0xcd   :  { %640 = vst [vmem:[%s1320_s3 + $0x18] sm:$0xff] %v394_v44  ;;  %v386_v48 = vadd.f32 %v1059_v34, %v385_v47  ;;  %672 = vst [vmem:[%s1320_s3 + $0x118] sm:$0xff] %v522_v46  ;;  %v514_v50 = vadd.f32 %v1059_v34, %v513_v49 }
  0xce   :  { %v811_v51 = vpop.f32.mrf.mxu0  ;;  %v843_v53 = vpop.f32.mrf.mxu1 }
  0xcf   :  { %638 = vst [vmem:[%s1320_s3 + $0x8] sm:$0xff] %v386_v48  ;;  %v407_v52 = vadd.f32 %v811_v51, %v1059_v34  ;;  %670 = vst [vmem:[%s1320_s3 + $0x108] sm:$0xff] %v514_v50  ;;  %v535_v54 = vadd.f32 %v843_v53, %v1059_v34 }
  0xd0   :  { %v398_v55 = vpop.f32.mrf.mxu0  ;;  %v526_v57 = vpop.f32.mrf.mxu1 }
  0xd1   :  { %643 = vst [vmem:[%s1320_s3 + $0x30] sm:$0xff] %v407_v52  ;;  %v399_v56 = vadd.f32 %v1059_v34, %v398_v55  ;;  %675 = vst [vmem:[%s1320_s3 + $0x130] sm:$0xff] %v535_v54  ;;  %v527_v58 = vadd.f32 %v1059_v34, %v526_v57 }
  0xd2   :  { %v812_v59 = vpop.f32.mrf.mxu0  ;;  %v844_v61 = vpop.f32.mrf.mxu1 }
  0xd3   :  { %641 = vst [vmem:[%s1320_s3 + $0x20] sm:$0xff] %v399_v56  ;;  %v410_v60 = vadd.f32 %v812_v59, %v1059_v34  ;;  %673 = vst [vmem:[%s1320_s3 + $0x120] sm:$0xff] %v527_v58  ;;  %v538_v62 = vadd.f32 %v844_v61, %v1059_v34 }
  0xd4   :  { %v401_v63 = vpop.f32.mrf.mxu0  ;;  %v529_v1 = vpop.f32.mrf.mxu1 }
  0xd5   :  { %644 = vst [vmem:[%s1320_s3 + $0x38] sm:$0xff] %v410_v60  ;;  %v402_v0 = vadd.f32 %v1059_v34, %v401_v63  ;;  %676 = vst [vmem:[%s1320_s3 + $0x138] sm:$0xff] %v538_v62  ;;  %v530_v2 = vadd.f32 %v1059_v34, %v529_v1 }
  0xd6   :  { %v815_v3 = vpop.f32.mrf.mxu0  ;;  %v847_v5 = vpop.f32.mrf.mxu1 }
  0xd7   :  { %642 = vst [vmem:[%s1320_s3 + $0x28] sm:$0xff] %v402_v0  ;;  %v423_v4 = vadd.f32 %v815_v3, %v1059_v34  ;;  %674 = vst [vmem:[%s1320_s3 + $0x128] sm:$0xff] %v530_v2  ;;  %v551_v6 = vadd.f32 %v847_v5, %v1059_v34 }
  0xd8   :  { %v414_v7 = vpop.f32.mrf.mxu0  ;;  %v542_v9 = vpop.f32.mrf.mxu1 }
  0xd9   :  { %647 = vst [vmem:[%s1320_s3 + $0x50] sm:$0xff] %v423_v4  ;;  %v415_v8 = vadd.f32 %v1059_v34, %v414_v7  ;;  %679 = vst [vmem:[%s1320_s3 + $0x150] sm:$0xff] %v551_v6  ;;  %v543_v10 = vadd.f32 %v1059_v34, %v542_v9 }
  0xda   :  { %v816_v11 = vpop.f32.mrf.mxu0  ;;  %v848_v13 = vpop.f32.mrf.mxu1 }
  0xdb   :  { %645 = vst [vmem:[%s1320_s3 + $0x40] sm:$0xff] %v415_v8  ;;  %v426_v12 = vadd.f32 %v816_v11, %v1059_v34  ;;  %677 = vst [vmem:[%s1320_s3 + $0x140] sm:$0xff] %v543_v10  ;;  %v554_v14 = vadd.f32 %v848_v13, %v1059_v34 }
  0xdc   :  { %v417_v15 = vpop.f32.mrf.mxu0  ;;  %v545_v17 = vpop.f32.mrf.mxu1 }
  0xdd   :  { %648 = vst [vmem:[%s1320_s3 + $0x58] sm:$0xff] %v426_v12  ;;  %v418_v16 = vadd.f32 %v1059_v34, %v417_v15  ;;  %680 = vst [vmem:[%s1320_s3 + $0x158] sm:$0xff] %v554_v14  ;;  %v546_v18 = vadd.f32 %v1059_v34, %v545_v17 }
  0xde   :  { %v819_v19 = vpop.f32.mrf.mxu0  ;;  %v851_v21 = vpop.f32.mrf.mxu1 }
  0xdf   :  { %646 = vst [vmem:[%s1320_s3 + $0x48] sm:$0xff] %v418_v16  ;;  %v439_v20 = vadd.f32 %v819_v19, %v1059_v34  ;;  %678 = vst [vmem:[%s1320_s3 + $0x148] sm:$0xff] %v546_v18  ;;  %v567_v22 = vadd.f32 %v851_v21, %v1059_v34 }
  0xe0   :  { %v430_v23 = vpop.f32.mrf.mxu0  ;;  %v558_v25 = vpop.f32.mrf.mxu1 }
  0xe1   :  { %651 = vst [vmem:[%s1320_s3 + $0x70] sm:$0xff] %v439_v20  ;;  %v431_v24 = vadd.f32 %v1059_v34, %v430_v23  ;;  %683 = vst [vmem:[%s1320_s3 + $0x170] sm:$0xff] %v567_v22  ;;  %v559_v26 = vadd.f32 %v1059_v34, %v558_v25 }
  0xe2   :  { %v820_v27 = vpop.f32.mrf.mxu0  ;;  %v852_v29 = vpop.f32.mrf.mxu1 }
  0xe3   :  { %649 = vst [vmem:[%s1320_s3 + $0x60] sm:$0xff] %v431_v24  ;;  %v442_v28 = vadd.f32 %v820_v27, %v1059_v34  ;;  %681 = vst [vmem:[%s1320_s3 + $0x160] sm:$0xff] %v559_v26  ;;  %v570_v30 = vadd.f32 %v852_v29, %v1059_v34 }
  0xe4   :  { %v433_v31 = vpop.f32.mrf.mxu0  ;;  %v561_v33 = vpop.f32.mrf.mxu1 }
  0xe5   :  { %652 = vst [vmem:[%s1320_s3 + $0x78] sm:$0xff] %v442_v28  ;;  %v434_v32 = vadd.f32 %v1059_v34, %v433_v31  ;;  %684 = vst [vmem:[%s1320_s3 + $0x178] sm:$0xff] %v570_v30  ;;  %v562_v35 = vadd.f32 %v1059_v34, %v561_v33 }
  0xe6   :  { %v823_v36 = vpop.f32.mrf.mxu0  ;;  %v855_v38 = vpop.f32.mrf.mxu1 }
  0xe7   :  { %650 = vst [vmem:[%s1320_s3 + $0x68] sm:$0xff] %v434_v32  ;;  %v455_v37 = vadd.f32 %v823_v36, %v1059_v34  ;;  %682 = vst [vmem:[%s1320_s3 + $0x168] sm:$0xff] %v562_v35  ;;  %v583_v39 = vadd.f32 %v855_v38, %v1059_v34 }
  0xe8   :  { %v446_v40 = vpop.f32.mrf.mxu0  ;;  %v574_v42 = vpop.f32.mrf.mxu1 }
  0xe9   :  { %655 = vst [vmem:[%s1320_s3 + $0x90] sm:$0xff] %v455_v37  ;;  %v447_v41 = vadd.f32 %v1059_v34, %v446_v40  ;;  %687 = vst [vmem:[%s1320_s3 + $0x190] sm:$0xff] %v583_v39  ;;  %v575_v43 = vadd.f32 %v1059_v34, %v574_v42 }
  0xea   :  { %v824_v44 = vpop.f32.mrf.mxu0  ;;  %v856_v46 = vpop.f32.mrf.mxu1 }
  0xeb   :  { %653 = vst [vmem:[%s1320_s3 + $0x80] sm:$0xff] %v447_v41  ;;  %v458_v45 = vadd.f32 %v824_v44, %v1059_v34  ;;  %685 = vst [vmem:[%s1320_s3 + $0x180] sm:$0xff] %v575_v43  ;;  %v586_v47 = vadd.f32 %v856_v46, %v1059_v34 }
  0xec   :  { %v449_v48 = vpop.f32.mrf.mxu0  ;;  %v577_v50 = vpop.f32.mrf.mxu1 }
  0xed   :  { %656 = vst [vmem:[%s1320_s3 + $0x98] sm:$0xff] %v458_v45  ;;  %v450_v49 = vadd.f32 %v1059_v34, %v449_v48  ;;  %688 = vst [vmem:[%s1320_s3 + $0x198] sm:$0xff] %v586_v47  ;;  %v578_v51 = vadd.f32 %v1059_v34, %v577_v50 }
  0xee   :  { %v827_v52 = vpop.f32.mrf.mxu0  ;;  %v859_v54 = vpop.f32.mrf.mxu1 }
  0xef   :  { %654 = vst [vmem:[%s1320_s3 + $0x88] sm:$0xff] %v450_v49  ;;  %v471_v53 = vadd.f32 %v827_v52, %v1059_v34  ;;  %686 = vst [vmem:[%s1320_s3 + $0x188] sm:$0xff] %v578_v51  ;;  %v599_v55 = vadd.f32 %v859_v54, %v1059_v34 }
  0xf0   :  { %v462_v56 = vpop.f32.mrf.mxu0  ;;  %v590_v58 = vpop.f32.mrf.mxu1 }
  0xf1   :  { %659 = vst [vmem:[%s1320_s3 + $0xb0] sm:$0xff] %v471_v53  ;;  %v463_v57 = vadd.f32 %v1059_v34, %v462_v56  ;;  %691 = vst [vmem:[%s1320_s3 + $0x1b0] sm:$0xff] %v599_v55  ;;  %v591_v59 = vadd.f32 %v1059_v34, %v590_v58 }
  0xf2   :  { %v828_v60 = vpop.f32.mrf.mxu0  ;;  %v860_v62 = vpop.f32.mrf.mxu1 }
  0xf3   :  { %657 = vst [vmem:[%s1320_s3 + $0xa0] sm:$0xff] %v463_v57  ;;  %v474_v61 = vadd.f32 %v828_v60, %v1059_v34  ;;  %689 = vst [vmem:[%s1320_s3 + $0x1a0] sm:$0xff] %v591_v59  ;;  %v602_v63 = vadd.f32 %v860_v62, %v1059_v34 }
  0xf4   :  { %v465_v0 = vpop.f32.mrf.mxu0  ;;  %v593_v2 = vpop.f32.mrf.mxu1 }
  0xf5   :  { %660 = vst [vmem:[%s1320_s3 + $0xb8] sm:$0xff] %v474_v61  ;;  %v466_v1 = vadd.f32 %v1059_v34, %v465_v0  ;;  %692 = vst [vmem:[%s1320_s3 + $0x1b8] sm:$0xff] %v602_v63  ;;  %v594_v3 = vadd.f32 %v1059_v34, %v593_v2 }
  0xf6   :  { %v831_v4 = vpop.f32.mrf.mxu0  ;;  %v863_v6 = vpop.f32.mrf.mxu1 }
  0xf7   :  { %658 = vst [vmem:[%s1320_s3 + $0xa8] sm:$0xff] %v466_v1  ;;  %v487_v5 = vadd.f32 %v831_v4, %v1059_v34  ;;  %690 = vst [vmem:[%s1320_s3 + $0x1a8] sm:$0xff] %v594_v3  ;;  %v615_v7 = vadd.f32 %v863_v6, %v1059_v34 }
  0xf8   :  { %v478_v8 = vpop.f32.mrf.mxu0  ;;  %v606_v10 = vpop.f32.mrf.mxu1 }
  0xf9   :  { %663 = vst [vmem:[%s1320_s3 + $0xd0] sm:$0xff] %v487_v5  ;;  %v479_v9 = vadd.f32 %v1059_v34, %v478_v8  ;;  %695 = vst [vmem:[%s1320_s3 + $0x1d0] sm:$0xff] %v615_v7  ;;  %v607_v11 = vadd.f32 %v1059_v34, %v606_v10 }
  0xfa   :  { %v832_v12 = vpop.f32.mrf.mxu0  ;;  %v864_v14 = vpop.f32.mrf.mxu1 }
  0xfb   :  { %661 = vst [vmem:[%s1320_s3 + $0xc0] sm:$0xff] %v479_v9  ;;  %v490_v13 = vadd.f32 %v832_v12, %v1059_v34  ;;  %693 = vst [vmem:[%s1320_s3 + $0x1c0] sm:$0xff] %v607_v11  ;;  %v618_v15 = vadd.f32 %v864_v14, %v1059_v34 }
  0xfc   :  { %v481_v16 = vpop.f32.mrf.mxu0  ;;  %v609_v18 = vpop.f32.mrf.mxu1 }
  0xfd   :  { %664 = vst [vmem:[%s1320_s3 + $0xd8] sm:$0xff] %v490_v13  ;;  %v482_v17 = vadd.f32 %v1059_v34, %v481_v16  ;;  %696 = vst [vmem:[%s1320_s3 + $0x1d8] sm:$0xff] %v618_v15  ;;  %v610_v19 = vadd.f32 %v1059_v34, %v609_v18 }
  0xfe   :  { %v835_v20 = vpop.f32.mrf.mxu0  ;;  %v867_v22 = vpop.f32.mrf.mxu1 }
  0xff   :  { %662 = vst [vmem:[%s1320_s3 + $0xc8] sm:$0xff] %v482_v17  ;;  %v503_v21 = vadd.f32 %v835_v20, %v1059_v34  ;;  %694 = vst [vmem:[%s1320_s3 + $0x1c8] sm:$0xff] %v610_v19  ;;  %v631_v23 = vadd.f32 %v867_v22, %v1059_v34 }
 0x100   :  { %v494_v24 = vpop.f32.mrf.mxu0  ;;  %v622_v26 = vpop.f32.mrf.mxu1 }
 0x101   :  { %667 = vst [vmem:[%s1320_s3 + $0xf0] sm:$0xff] %v503_v21  ;;  %v495_v25 = vadd.f32 %v1059_v34, %v494_v24  ;;  %699 = vst [vmem:[%s1320_s3 + $0x1f0] sm:$0xff] %v631_v23  ;;  %v623_v27 = vadd.f32 %v1059_v34, %v622_v26 }
 0x102   :  { %v836_v28 = vpop.f32.mrf.mxu0  ;;  %v868_v30 = vpop.f32.mrf.mxu1 }
 0x103   :  { %665 = vst [vmem:[%s1320_s3 + $0xe0] sm:$0xff] %v495_v25  ;;  %v506_v29 = vadd.f32 %v836_v28, %v1059_v34  ;;  %697 = vst [vmem:[%s1320_s3 + $0x1e0] sm:$0xff] %v623_v27  ;;  %v634_v31 = vadd.f32 %v868_v30, %v1059_v34 }
 0x104   :  { %v497_v32 = vpop.f32.mrf.mxu0  ;;  %v625_v35 = vpop.f32.mrf.mxu1 }
 0x105   :  { %668 = vst [vmem:[%s1320_s3 + $0xf8] sm:$0xff] %v506_v29  ;;  %v498_v33 = vadd.f32 %v1059_v34, %v497_v32  ;;  %700 = vst [vmem:[%s1320_s3 + $0x1f8] sm:$0xff] %v634_v31  ;;  %v626_v36 = vadd.f32 %v1059_v34, %v625_v35 }
 0x107   :  { %666 = vst [vmem:[%s1320_s3 + $0xe8] sm:$0xff] %v498_v33  ;;  %698 = vst [vmem:[%s1320_s3 + $0x1e8] sm:$0xff] %v626_v36 }

// kernel: decoder_block.6
= control target key start
LH: loop header
LB: loop body
LE: loop exit
PB: predicated region body
PF: predicated region fallthrough
CT: control target
= control target key end

     0   :  { %s2580_s15 = smov 0   ;;  %s2582_s16 = smov 0   ;;  %s3004_s0 = inlined_call_operand.vmem [shape: bf16[2048,72], index: 0, kind: input, shape index: {}]   ;;  %s3005_s1 = inlined_call_operand.vmem [shape: bf16[72,128], index: 1, kind: input, shape index: {}]   ;;  %s3006_s2 = inlined_call_operand.vmem [shape: f32[1,128], index: 2, kind: input, shape index: {}]   ;;  %s3007_s3 = inlined_call_operand.vmem [shape: bf16[2048,128], index: 3, kind: output, shape index: {0}]   ;;  %s3008_s4 = inlined_call_operand.vmem [shape: f32[4,2,128], index: 4, kind: output, shape index: {1}]  }
   0x1   :  { %s2584_s17 = smov 0  }
   0x2 LB: > { %s27_s18 = sadd.s32 1, %s2549_s16  ;;  %p1950_p0 = scmp.ge.s32.totalorder %s2553_s17, 1  ;;  %s2553_s17 = sphi %s2584_s17, %s15_s17   ;;  %s2549_s16 = sphi %s2582_s16, %s3010_s16   ;;  %s2545_s15 = sphi %s2580_s15, %s3009_s15  }
   0x3   : > { %p29_p1 = scmp.ge.s32.totalorder %s27_s18, 4  ;;  %p194_p2 = scmp.lt.s32.totalorder %s2553_s17, 5 }
   0x5   : > { %s3012_s18 = smov (%p29_p1, %s27_s18), 0  ;;  %p195_p3 = pnand %p1950_p0, %p194_p2 }
   0x6   : > { %s1951_s23 = sshll.u32 (!%p195_p3), %s2545_s15, 6  ;;  %p253_p5 = scmp.lt.s32.totalorder (!%p195_p3), %s2545_s15, 3 }
   0x7   : > { %198 = sbr.rel (%p195_p3) target bundleno = 376 (0x178), region = 32  ;;  %p233_p4 = scmp.lt.s32.totalorder (!%p195_p3), %s1951_s23, 255 }
   0xc   : > { %v2494_v0 = vld [vmem:[%s3005_s1 + $0x20] ss:$0 sps:$4 sm:$0xff]   ;;  %vm747_vm0 = vcmask 1043456   ;;  %v2495_v1 = vld [vmem:[%s3005_s1 + $0x18] sm:$0xff]   ;;  %v2496_v3 = vld [vmem:[%s3005_s1 + $0x10] sm:$0xff]   ;;  %s3014_s23 = smov (!%p233_p4, %s1951_s23), 255 }
   0xd   : > { %2468 = vmatprep.subr.msk.bf16.mxu0 %vm747_vm0, %v2494_v0  ;;  %v749_v2 = vsel %vm747_vm0, %v2494_v0, 0  ;;  %2469 = vmatprep.subr.msk.bf16.mxu1 %vm747_vm0, %v2494_v0  ;;  %v2497_v4 = vld [vmem:[%s3005_s1 + $0x8] sm:$0xff]   ;;  %s1952_s28 = sshll.u32 %s3014_s23, 2  ;;  %vm650_vm1 = vcmask 588800   ;;  %v2498_v6 = vld [vmem:[%s3005_s1] sm:$0xff]   ;;  %s3016_s15 = smov (!%p253_p5, %s2545_s15), 3 }
   0xe   : > { %2385 = vmatpush3.bf16.msra.mxu0 %v749_v2  ;;  %2463 = vmatpush3.bf16.msra.mxu1 %v749_v2  ;;  %s2621_s5 = scalar_lea.vmem %s3004_s0, %s1952_s28  ;;  %v2693_v39 = vld [vmem:[%s3006_s2] ss:$0 sm:$0xff]  ;;  %s2703_s12 = scalar_lea.vmem %s3007_s3, %s1952_s28  ;;  %vm1828_vm2 = vcmask 1040384  }
   0xf   : > { %2386 = vmatprep.subr.bf16.mxu0 %v2495_v1  ;;  %2459 = vmatprep.subr.bf16.mxu1 %v2495_v1  ;;  %v2499_v5 = vld [vmem:[%s2621_s5] sm:$0xff]   ;;  %v2500_v7 = vld [vmem:[%s2621_s5 + $0x8] sm:$0xff]   ;;  %v2501_v8 = vld [vmem:[%s2621_s5 + $0x10] sm:$0xff]   ;;  %s1955_s13 = sshll.u32 %s3016_s15, 1 }
  0x10   : > { %2394 = vmatprep.mubr.msk.bf16.mxu0 %vm650_vm1, %v2499_v5  ;;  %v2502_v9 = vld [vmem:[%s2621_s5 + $0x18] sm:$0xff]   ;;  %v2503_v10 = vld [vmem:[%s2621_s5 + $0x20] sm:$0xff]   ;;  %v2516_v12 = vld [vmem:[%s2621_s5 + $0x88] sm:$0xff]   ;;  %s256_s20 = scalar_lea.vmem %s3008_s4, %s1955_s13 }
  0x11   : > { %v2515_v11 = vld [vmem:[%s2621_s5 + $0x80] sm:$0xff]   ;;  %v2517_v13 = vld [vmem:[%s2621_s5 + $0x90] sm:$0xff]   ;;  %v2504_v14 = vld [vmem:[%s2621_s5 + $0x28] sm:$0xff]  }
  0x12   : > { %2387 = vmatpush3.bf16.msra.mxu0 %v2495_v1  ;;  %2464 = vmatpush3.bf16.msra.mxu1 %v2495_v1  ;;  %v2518_v15 = vld [vmem:[%s2621_s5 + $0x98] sm:$0xff]   ;;  %v2519_v16 = vld [vmem:[%s2621_s5 + $0xa0] sm:$0xff]   ;;  %v2505_v17 = vld [vmem:[%s2621_s5 + $0x30] sm:$0xff]  }
  0x13   : > { %2388 = vmatprep.subr.bf16.mxu0 %v2496_v3  ;;  %2460 = vmatprep.subr.bf16.mxu1 %v2496_v3  ;;  %v2520_v18 = vld [vmem:[%s2621_s5 + $0xa8] sm:$0xff]   ;;  %v2506_v19 = vld [vmem:[%s2621_s5 + $0x38] sm:$0xff]   ;;  %v2521_v20 = vld [vmem:[%s2621_s5 + $0xb0] sm:$0xff]  }
  0x14   : > { %2426 = vmatprep.mubr.msk.bf16.mxu1 %vm650_vm1, %v2515_v11  ;;  %v2507_v21 = vld [vmem:[%s2621_s5 + $0x40] sm:$0xff]   ;;  %v2522_v22 = vld [vmem:[%s2621_s5 + $0xb8] sm:$0xff]   ;;  %v2508_v23 = vld [vmem:[%s2621_s5 + $0x48] sm:$0xff]  }
  0x15   : > { %v2523_v24 = vld [vmem:[%s2621_s5 + $0xc0] sm:$0xff]   ;;  %v2509_v25 = vld [vmem:[%s2621_s5 + $0x50] sm:$0xff]   ;;  %v2524_v26 = vld [vmem:[%s2621_s5 + $0xc8] sm:$0xff]  }
  0x16   : > { %2389 = vmatpush3.bf16.msra.mxu0 %v2496_v3  ;;  %2465 = vmatpush3.bf16.msra.mxu1 %v2496_v3  ;;  %v2510_v27 = vld [vmem:[%s2621_s5 + $0x58] sm:$0xff]   ;;  %v2525_v28 = vld [vmem:[%s2621_s5 + $0xd0] sm:$0xff]   ;;  %v2511_v29 = vld [vmem:[%s2621_s5 + $0x60] sm:$0xff]  }
  0x17   : > { %2390 = vmatprep.subr.bf16.mxu0 %v2497_v4  ;;  %2461 = vmatprep.subr.bf16.mxu1 %v2497_v4  ;;  %v2526_v30 = vld [vmem:[%s2621_s5 + $0xd8] sm:$0xff]   ;;  %v2512_v31 = vld [vmem:[%s2621_s5 + $0x68] sm:$0xff]   ;;  %v2527_v32 = vld [vmem:[%s2621_s5 + $0xe0] sm:$0xff]  }
  0x18   : > { %v2513_v33 = vld [vmem:[%s2621_s5 + $0x70] sm:$0xff]   ;;  %v2528_v34 = vld [vmem:[%s2621_s5 + $0xe8] sm:$0xff]   ;;  %v2514_v35 = vld [vmem:[%s2621_s5 + $0x78] sm:$0xff]  }
  0x19   : > { %v2529_v36 = vld [vmem:[%s2621_s5 + $0xf0] sm:$0xff]   ;;  %v2530_v37 = vld [vmem:[%s2621_s5 + $0xf8] sm:$0xff]  }
  0x1a   : > { %2391 = vmatpush3.bf16.msra.mxu0 %v2497_v4  ;;  %2466 = vmatpush3.bf16.msra.mxu1 %v2497_v4 }
  0x1b   : > { %2392 = vmatprep.subr.bf16.mxu0 %v2498_v6  ;;  %2462 = vmatprep.subr.bf16.mxu1 %v2498_v6 }
  0x1e   : > { %2393 = vmatpush3.bf16.msra.mxu0 %v2498_v6  ;;  %2467 = vmatpush3.bf16.msra.mxu1 %v2498_v6 }
  0x21   : > { %2395 = vmatmul.mubr.msk.bf16.vlgmr.msra.gmra.mxu0 %vm650_vm1, %v2500_v7  ;;  %2427 = vmatmul.mubr.msk.bf16.vlgmr.msra.gmra.mxu1 %vm650_vm1, %v2516_v12 }
  0x22   : > { %2398 = vmatprep.mubr.msk.bf16.mxu0 %vm650_vm1, %v2501_v8  ;;  %2430 = vmatprep.mubr.msk.bf16.mxu1 %vm650_vm1, %v2517_v13 }
  0x29   : > { %2399 = vmatmul.mubr.msk.bf16.gmra.mxu0 %vm650_vm1, %v2502_v9  ;;  %2431 = vmatmul.mubr.msk.bf16.gmra.mxu1 %vm650_vm1, %v2518_v15 }
  0x2a   : > { %2402 = vmatprep.mubr.msk.bf16.mxu0 %vm650_vm1, %v2503_v10  ;;  %2434 = vmatprep.mubr.msk.bf16.mxu1 %vm650_vm1, %v2519_v16 }
  0x31   : > { %2403 = vmatmul.mubr.msk.bf16.gmra.mxu0 %vm650_vm1, %v2504_v14  ;;  %2435 = vmatmul.mubr.msk.bf16.gmra.mxu1 %vm650_vm1, %v2520_v18 }
  0x32   : > { %2406 = vmatprep.mubr.msk.bf16.mxu0 %vm650_vm1, %v2505_v17  ;;  %2438 = vmatprep.mubr.msk.bf16.mxu1 %vm650_vm1, %v2521_v20 }
  0x39   : > { %2407 = vmatmul.mubr.msk.bf16.gmra.mxu0 %vm650_vm1, %v2506_v19  ;;  %2439 = vmatmul.mubr.msk.bf16.gmra.mxu1 %vm650_vm1, %v2522_v22 }
  0x3a   : > { %2410 = vmatprep.mubr.msk.bf16.mxu0 %vm650_vm1, %v2507_v21  ;;  %2442 = vmatprep.mubr.msk.bf16.mxu1 %vm650_vm1, %v2523_v24 }
  0x41   : > { %2411 = vmatmul.mubr.msk.bf16.gmra.mxu0 %vm650_vm1, %v2508_v23  ;;  %2443 = vmatmul.mubr.msk.bf16.gmra.mxu1 %vm650_vm1, %v2524_v26 }
  0x42   : > { %2414 = vmatprep.mubr.msk.bf16.mxu0 %vm650_vm1, %v2509_v25  ;;  %2446 = vmatprep.mubr.msk.bf16.mxu1 %vm650_vm1, %v2525_v28 }
  0x49   : > { %2415 = vmatmul.mubr.msk.bf16.gmra.mxu0 %vm650_vm1, %v2510_v27  ;;  %2447 = vmatmul.mubr.msk.bf16.gmra.mxu1 %vm650_vm1, %v2526_v30 }
  0x4a   : > { %2418 = vmatprep.mubr.msk.bf16.mxu0 %vm650_vm1, %v2511_v29  ;;  %2450 = vmatprep.mubr.msk.bf16.mxu1 %vm650_vm1, %v2527_v32 }
  0x51   : > { %2419 = vmatmul.mubr.msk.bf16.gmra.mxu0 %vm650_vm1, %v2512_v31  ;;  %2451 = vmatmul.mubr.msk.bf16.gmra.mxu1 %vm650_vm1, %v2528_v34 }
  0x52   : > { %2422 = vmatprep.mubr.msk.bf16.mxu0 %vm650_vm1, %v2513_v33  ;;  %2454 = vmatprep.mubr.msk.bf16.mxu1 %vm650_vm1, %v2529_v36 }
  0x59   : > { %2423 = vmatmul.mubr.msk.bf16.gmra.mxu0 %vm650_vm1, %v2514_v35  ;;  %2455 = vmatmul.mubr.msk.bf16.gmra.mxu1 %vm650_vm1, %v2530_v37 }
  0xe1   : > { %v2396_v38 = vpop.f32.mrf.mxu0  ;;  %v2428_v48 = vpop.f32.mrf.mxu1 }
  0xe2   : > { %v1244_v42 = vadd.f32 %v2396_v38, %v2693_v39  ;;  %v2708_v56 = vadd.f32 %v2428_v48, %v2693_v39 }
  0xe3   : > { %v785_v40 = vpop.f32.mrf.mxu0  ;;  %v913_v54 = vpop.f32.mrf.mxu1 }
  0xe4   : > { %v1242_v43 = vadd.f32 %v2693_v39, %v785_v40  ;;  %v1697_v57 = vmul.f32 %v1244_v42, %v1244_v42  ;;  %v2713_v0 = vadd.f32 %v2693_v39, %v913_v54 }
  0xe5   : > { %v2397_v41 = vpop.f32.mrf.mxu0  ;;  %v2429_v61 = vpop.f32.mrf.mxu1 }
  0xe6   : > { %v1245_v44 = vadd.f32 %v2397_v41, %v2693_v39  ;;  %v1695_v50 = vmul.f32 %v1242_v43, %v1242_v43  ;;  %v2716_v1 = vadd.f32 %v2429_v61, %v2693_v39 }
  0xe7   : > { %v788_v45 = vpop.f32.mrf.mxu0  ;;  %v916_v6 = vpop.f32.mrf.mxu1 }
  0xe8   : > { %v2164_v46 = vpack.c.bf16 %v1245_v44, %v1244_v42  ;;  %v1243_v47 = vadd.f32 %v2693_v39, %v788_v45  ;;  %v1698_v62 = vmul.f32 %v1245_v44, %v1245_v44  ;;  %v2244_v8 = vpack.c.bf16 %v2716_v1, %v2708_v56 }
  0xe9   : > { %v2400_v49 = vpop.f32.mrf.mxu0  ;;  %v2723_v9 = vadd.f32 %v2693_v39, %v916_v6  ;;  %v2432_v14 = vpop.f32.mrf.mxu1 }
  0xea   : > { %2316 = vst [vmem:[%s2703_s12 + $0x8] sm:$0xff] %v2164_v46   ;;  %v2159_v51 = vpack.c.bf16 %v1243_v47, %v1242_v43  ;;  %v1626_v52 = vadd.f32 %v1243_v47, %v1242_v43  ;;  %v1696_v53 = vmul.f32 %v1243_v47, %v1243_v47  ;;  %v1248_v3 = vadd.f32 %v2400_v49, %v2693_v39 }
  0xeb   : > { %v801_v55 = vpop.f32.mrf.mxu0  ;;  %2332 = vst [vmem:[%s2703_s12 + $0x88] sm:$0xff] %v2244_v8   ;;  %v2239_v17 = vpack.c.bf16 %v2723_v9, %v2713_v0  ;;  %v929_v19 = vpop.f32.mrf.mxu1  ;;  %v2732_v24 = vadd.f32 %v2432_v14, %v2693_v39 }
  0xec   : > { %2160 = vst [vmem:[%s2703_s12] sm:$0xff] %v2159_v51   ;;  %v1627_v58 = vadd.f32 %v1626_v52, %v1244_v42  ;;  %v1759_v59 = vadd.f32 %v1696_v53, %v1695_v50  ;;  %v1246_v60 = vadd.f32 %v2693_v39, %v801_v55  ;;  %v1701_v25 = vmul.f32 %v1248_v3, %v1248_v3 }
  0xed   : > { %v2401_v63 = vpop.f32.mrf.mxu0  ;;  %2331 = vst [vmem:[%s2703_s12 + $0x80] sm:$0xff] %v2239_v17   ;;  %v2433_v26 = vpop.f32.mrf.mxu1  ;;  %v2742_v34 = vadd.f32 %v2693_v39, %v929_v19 }
  0xee   : > { %v1760_v2 = vadd.f32 %v1759_v59, %v1697_v57  ;;  %v1628_v4 = vadd.f32 %v1627_v58, %v1245_v44  ;;  %v1249_v5 = vadd.f32 %v2401_v63, %v2693_v39  ;;  %v1699_v11 = vmul.f32 %v1246_v60, %v1246_v60 }
  0xef   : > { %v804_v7 = vpop.f32.mrf.mxu0  ;;  %v2737_v31 = vadd.f32 %v2433_v26, %v2693_v39  ;;  %v932_v35 = vpop.f32.mrf.mxu1 }
  0xf0   : > { %v1629_v10 = vadd.f32 %v1628_v4, %v1246_v60  ;;  %v1761_v12 = vadd.f32 %v1760_v2, %v1698_v62  ;;  %v2174_v13 = vpack.c.bf16 %v1249_v5, %v1248_v3  ;;  %v1247_v15 = vadd.f32 %v2693_v39, %v804_v7 }
  0xf1   : > { %v2404_v16 = vpop.f32.mrf.mxu0  ;;  %v1702_v36 = vmul.f32 %v1249_v5, %v1249_v5  ;;  %v2254_v41 = vpack.c.bf16 %v2737_v31, %v2732_v24  ;;  %v2748_v44 = vadd.f32 %v2693_v39, %v932_v35  ;;  %v2436_v45 = vpop.f32.mrf.mxu1 }
  0xf2   : > { %v1762_v18 = vadd.f32 %v1761_v12, %v1699_v11  ;;  %2318 = vst [vmem:[%s2703_s12 + $0x18] sm:$0xff] %v2174_v13   ;;  %v2169_v20 = vpack.c.bf16 %v1247_v15, %v1246_v60  ;;  %v1630_v21 = vadd.f32 %v1629_v10, %v1247_v15  ;;  %v1700_v22 = vmul.f32 %v1247_v15, %v1247_v15 }
  0xf3   : > { %v817_v23 = vpop.f32.mrf.mxu0  ;;  %v1252_v32 = vadd.f32 %v2404_v16, %v2693_v39  ;;  %2334 = vst [vmem:[%s2703_s12 + $0x98] sm:$0xff] %v2254_v41   ;;  %v2249_v52 = vpack.c.bf16 %v2748_v44, %v2742_v34  ;;  %v945_v53 = vpop.f32.mrf.mxu1  ;;  %v2755_v58 = vadd.f32 %v2436_v45, %v2693_v39 }
  0xf4   : > { %2317 = vst [vmem:[%s2703_s12 + $0x10] sm:$0xff] %v2169_v20   ;;  %v1631_v27 = vadd.f32 %v1630_v21, %v1248_v3  ;;  %v1763_v28 = vadd.f32 %v1762_v18, %v1700_v22  ;;  %v1250_v29 = vadd.f32 %v2693_v39, %v817_v23  ;;  %v2766_v6 = vadd.f32 %v2693_v39, %v945_v53 }
  0xf5   : > { %v2405_v30 = vpop.f32.mrf.mxu0  ;;  %v1705_v59 = vmul.f32 %v1252_v32, %v1252_v32  ;;  %2333 = vst [vmem:[%s2703_s12 + $0x90] sm:$0xff] %v2249_v52   ;;  %v2437_v60 = vpop.f32.mrf.mxu1 }
  0xf6   : > { %v1253_v33 = vadd.f32 %v2405_v30, %v2693_v39  ;;  %v1764_v37 = vadd.f32 %v1763_v28, %v1701_v25  ;;  %v1632_v38 = vadd.f32 %v1631_v27, %v1249_v5  ;;  %v1703_v47 = vmul.f32 %v1250_v29, %v1250_v29 }
  0xf7   : > { %v820_v40 = vpop.f32.mrf.mxu0  ;;  %v2761_v3 = vadd.f32 %v2437_v60, %v2693_v39  ;;  %v948_v7 = vpop.f32.mrf.mxu1 }
  0xf8   : > { %v2184_v42 = vpack.c.bf16 %v1253_v33, %v1252_v32  ;;  %v1251_v43 = vadd.f32 %v2693_v39, %v820_v40  ;;  %v1633_v46 = vadd.f32 %v1632_v38, %v1250_v29  ;;  %v1765_v48 = vadd.f32 %v1764_v37, %v1702_v36 }
  0xf9   : > { %v2408_v49 = vpop.f32.mrf.mxu0  ;;  %v1706_v8 = vmul.f32 %v1253_v33, %v1253_v33  ;;  %v2264_v13 = vpack.c.bf16 %v2761_v3, %v2755_v58  ;;  %v2772_v16 = vadd.f32 %v2693_v39, %v948_v7  ;;  %v2440_v17 = vpop.f32.mrf.mxu1 }
  0xfa   : > { %2320 = vst [vmem:[%s2703_s12 + $0x28] sm:$0xff] %v2184_v42   ;;  %v2179_v50 = vpack.c.bf16 %v1251_v43, %v1250_v29  ;;  %v1704_v51 = vmul.f32 %v1251_v43, %v1251_v43  ;;  %v1766_v54 = vadd.f32 %v1765_v48, %v1703_v47  ;;  %v1634_v55 = vadd.f32 %v1633_v46, %v1251_v43 }
  0xfb   : > { %v833_v57 = vpop.f32.mrf.mxu0  ;;  %v1256_v4 = vadd.f32 %v2408_v49, %v2693_v39  ;;  %2336 = vst [vmem:[%s2703_s12 + $0xa8] sm:$0xff] %v2264_v13   ;;  %v2259_v25 = vpack.c.bf16 %v2772_v16, %v2766_v6  ;;  %v961_v26 = vpop.f32.mrf.mxu1  ;;  %v2779_v30 = vadd.f32 %v2440_v17, %v2693_v39 }
  0xfc   : > { %2319 = vst [vmem:[%s2703_s12 + $0x20] sm:$0xff] %v2179_v50   ;;  %v1635_v61 = vadd.f32 %v1634_v55, %v1252_v32  ;;  %v1767_v62 = vadd.f32 %v1766_v54, %v1704_v51  ;;  %v1254_v63 = vadd.f32 %v2693_v39, %v833_v57  ;;  %v2790_v43 = vadd.f32 %v2693_v39, %v961_v26 }
  0xfd   : > { %v2409_v2 = vpop.f32.mrf.mxu0  ;;  %v1709_v32 = vmul.f32 %v1256_v4, %v1256_v4  ;;  %2335 = vst [vmem:[%s2703_s12 + $0xa0] sm:$0xff] %v2259_v25  }
  0xfe   : > { %v1257_v5 = vadd.f32 %v2409_v2, %v2693_v39  ;;  %v1768_v10 = vadd.f32 %v1767_v62, %v1705_v59  ;;  %v1636_v11 = vadd.f32 %v1635_v61, %v1253_v33  ;;  %v1707_v19 = vmul.f32 %v1254_v63, %v1254_v63  ;;  %v2441_v33 = vpop.f32.mrf.mxu1 }
  0xff   : > { %v836_v12 = vpop.f32.mrf.mxu0  ;;  %v2785_v40 = vadd.f32 %v2441_v33, %v2693_v39 }
 0x100   : > { %v2194_v14 = vpack.c.bf16 %v1257_v5, %v1256_v4  ;;  %v1255_v15 = vadd.f32 %v2693_v39, %v836_v12  ;;  %v1637_v18 = vadd.f32 %v1636_v11, %v1254_v63  ;;  %v1769_v20 = vadd.f32 %v1768_v10, %v1706_v8  ;;  %v964_v45 = vpop.f32.mrf.mxu1 }
 0x101   : > { %v2412_v21 = vpop.f32.mrf.mxu0  ;;  %v1710_v46 = vmul.f32 %v1257_v5, %v1257_v5  ;;  %v2274_v50 = vpack.c.bf16 %v2785_v40, %v2779_v30  ;;  %v2796_v53 = vadd.f32 %v2693_v39, %v964_v45 }
 0x102   : > { %2322 = vst [vmem:[%s2703_s12 + $0x38] sm:$0xff] %v2194_v14   ;;  %v2189_v22 = vpack.c.bf16 %v1255_v15, %v1254_v63  ;;  %v1708_v23 = vmul.f32 %v1255_v15, %v1255_v15  ;;  %v1770_v27 = vadd.f32 %v1769_v20, %v1707_v19  ;;  %v1638_v28 = vadd.f32 %v1637_v18, %v1255_v15  ;;  %v2444_v54 = vpop.f32.mrf.mxu1 }
 0x103   : > { %v849_v29 = vpop.f32.mrf.mxu0  ;;  %v1260_v41 = vadd.f32 %v2412_v21, %v2693_v39  ;;  %2338 = vst [vmem:[%s2703_s12 + $0xb8] sm:$0xff] %v2274_v50   ;;  %v2269_v63 = vpack.c.bf16 %v2796_v53, %v2790_v43  ;;  %v2803_v8 = vadd.f32 %v2444_v54, %v2693_v39 }
 0x104   : > { %2321 = vst [vmem:[%s2703_s12 + $0x30] sm:$0xff] %v2189_v22   ;;  %v1639_v35 = vadd.f32 %v1638_v28, %v1256_v4  ;;  %v1771_v36 = vadd.f32 %v1770_v27, %v1708_v23  ;;  %v1258_v37 = vadd.f32 %v2693_v39, %v849_v29  ;;  %v977_v2 = vpop.f32.mrf.mxu1 }
 0x105   : > { %v2413_v38 = vpop.f32.mrf.mxu0  ;;  %v1713_v10 = vmul.f32 %v1260_v41, %v1260_v41  ;;  %2337 = vst [vmem:[%s2703_s12 + $0xb0] sm:$0xff] %v2269_v63   ;;  %v2814_v20 = vadd.f32 %v2693_v39, %v977_v2 }
 0x106   : > { %v1261_v42 = vadd.f32 %v2413_v38, %v2693_v39  ;;  %v1772_v47 = vadd.f32 %v1771_v36, %v1709_v32  ;;  %v1640_v48 = vadd.f32 %v1639_v35, %v1257_v5  ;;  %v1711_v57 = vmul.f32 %v1258_v37, %v1258_v37  ;;  %v2445_v11 = vpop.f32.mrf.mxu1 }
 0x107   : > { %v852_v49 = vpop.f32.mrf.mxu0  ;;  %v2809_v17 = vadd.f32 %v2445_v11, %v2693_v39 }
 0x108   : > { %v2204_v51 = vpack.c.bf16 %v1261_v42, %v1260_v41  ;;  %v1259_v52 = vadd.f32 %v2693_v39, %v852_v49  ;;  %v1641_v55 = vadd.f32 %v1640_v48, %v1258_v37  ;;  %v1773_v59 = vadd.f32 %v1772_v47, %v1710_v46  ;;  %v980_v21 = vpop.f32.mrf.mxu1 }
 0x109   : > { %v2416_v60 = vpop.f32.mrf.mxu0  ;;  %v1714_v22 = vmul.f32 %v1261_v42, %v1261_v42  ;;  %v2284_v27 = vpack.c.bf16 %v2809_v17, %v2803_v8  ;;  %v2820_v32 = vadd.f32 %v2693_v39, %v980_v21 }
 0x10a   : > { %2324 = vst [vmem:[%s2703_s12 + $0x48] sm:$0xff] %v2204_v51   ;;  %v2199_v61 = vpack.c.bf16 %v1259_v52, %v1258_v37  ;;  %v1712_v62 = vmul.f32 %v1259_v52, %v1259_v52  ;;  %v1774_v4 = vadd.f32 %v1773_v59, %v1711_v57  ;;  %v1642_v5 = vadd.f32 %v1641_v55, %v1259_v52  ;;  %v2448_v33 = vpop.f32.mrf.mxu1 }
 0x10b   : > { %v865_v7 = vpop.f32.mrf.mxu0  ;;  %v1264_v18 = vadd.f32 %v2416_v60, %v2693_v39  ;;  %2340 = vst [vmem:[%s2703_s12 + $0xc8] sm:$0xff] %v2284_v27   ;;  %v2279_v45 = vpack.c.bf16 %v2820_v32, %v2814_v20  ;;  %v2827_v50 = vadd.f32 %v2448_v33, %v2693_v39 }
 0x10c   : > { %2323 = vst [vmem:[%s2703_s12 + $0x40] sm:$0xff] %v2199_v61   ;;  %v1643_v12 = vadd.f32 %v1642_v5, %v1260_v41  ;;  %v1775_v13 = vadd.f32 %v1774_v4, %v1712_v62  ;;  %v1262_v14 = vadd.f32 %v2693_v39, %v865_v7  ;;  %v993_v46 = vpop.f32.mrf.mxu1 }
 0x10d   : > { %v2417_v15 = vpop.f32.mrf.mxu0  ;;  %v1717_v51 = vmul.f32 %v1264_v18, %v1264_v18  ;;  %2339 = vst [vmem:[%s2703_s12 + $0xc0] sm:$0xff] %v2279_v45   ;;  %v2838_v63 = vadd.f32 %v2693_v39, %v993_v46 }
 0x10e   : > { %v1265_v19 = vadd.f32 %v2417_v15, %v2693_v39  ;;  %v1776_v23 = vadd.f32 %v1775_v13, %v1713_v10  ;;  %v1644_v25 = vadd.f32 %v1643_v12, %v1261_v42  ;;  %v1715_v36 = vmul.f32 %v1262_v14, %v1262_v14  ;;  %v2449_v52 = vpop.f32.mrf.mxu1 }
 0x10f   : > { %v868_v26 = vpop.f32.mrf.mxu0  ;;  %v2833_v60 = vadd.f32 %v2449_v52, %v2693_v39 }
 0x110   : > { %v2214_v28 = vpack.c.bf16 %v1265_v19, %v1264_v18  ;;  %v1263_v29 = vadd.f32 %v2693_v39, %v868_v26  ;;  %v1645_v35 = vadd.f32 %v1644_v25, %v1262_v14  ;;  %v1777_v37 = vadd.f32 %v1776_v23, %v1714_v22  ;;  %v996_v2 = vpop.f32.mrf.mxu1 }
 0x111   : > { %v2420_v38 = vpop.f32.mrf.mxu0  ;;  %v1718_v4 = vmul.f32 %v1265_v19, %v1265_v19  ;;  %v2294_v11 = vpack.c.bf16 %v2833_v60, %v2827_v50 }
 0x112   : > { %2326 = vst [vmem:[%s2703_s12 + $0x58] sm:$0xff] %v2214_v28   ;;  %v2209_v41 = vpack.c.bf16 %v1263_v29, %v1262_v14  ;;  %v1716_v42 = vmul.f32 %v1263_v29, %v1263_v29  ;;  %v1778_v47 = vadd.f32 %v1777_v37, %v1715_v36  ;;  %v1646_v48 = vadd.f32 %v1645_v35, %v1263_v29  ;;  %v2452_v15 = vpop.f32.mrf.mxu1 }
 0x113   : > { %v881_v49 = vpop.f32.mrf.mxu0  ;;  %v1268_v61 = vadd.f32 %v2420_v38, %v2693_v39  ;;  %v2844_v14 = vadd.f32 %v2693_v39, %v996_v2  ;;  %2342 = vst [vmem:[%s2703_s12 + $0xd8] sm:$0xff] %v2294_v11   ;;  %v2851_v35 = vadd.f32 %v2452_v15, %v2693_v39 }
 0x114   : > { %2325 = vst [vmem:[%s2703_s12 + $0x50] sm:$0xff] %v2209_v41   ;;  %v1647_v54 = vadd.f32 %v1646_v48, %v1264_v18  ;;  %v1779_v55 = vadd.f32 %v1778_v47, %v1716_v42  ;;  %v1266_v57 = vadd.f32 %v2693_v39, %v881_v49  ;;  %v1009_v27 = vpop.f32.mrf.mxu1 }
 0x115   : > { %v2421_v59 = vpop.f32.mrf.mxu0  ;;  %v2289_v26 = vpack.c.bf16 %v2844_v14, %v2838_v63  ;;  %v1721_v36 = vmul.f32 %v1268_v61, %v1268_v61  ;;  %v2862_v49 = vadd.f32 %v2693_v39, %v1009_v27 }
 0x116   : > { %v1269_v62 = vadd.f32 %v2421_v59, %v2693_v39  ;;  %v1780_v5 = vadd.f32 %v1779_v55, %v1717_v51  ;;  %v1648_v7 = vadd.f32 %v1647_v54, %v1265_v19  ;;  %v1719_v21 = vmul.f32 %v1266_v57, %v1266_v57  ;;  %v2453_v37 = vpop.f32.mrf.mxu1 }
 0x117   : > { %v884_v10 = vpop.f32.mrf.mxu0  ;;  %2341 = vst [vmem:[%s2703_s12 + $0xd0] sm:$0xff] %v2289_v26   ;;  %v2857_v46 = vadd.f32 %v2453_v37, %v2693_v39 }
 0x118   : > { %v2224_v12 = vpack.c.bf16 %v1269_v62, %v1268_v61  ;;  %v1267_v13 = vadd.f32 %v2693_v39, %v884_v10  ;;  %v1649_v18 = vadd.f32 %v1648_v7, %v1266_v57  ;;  %v1781_v22 = vadd.f32 %v1780_v5, %v1718_v4  ;;  %v1012_v51 = vpop.f32.mrf.mxu1 }
 0x119   : > { %v2424_v23 = vpop.f32.mrf.mxu0  ;;  %v1722_v52 = vmul.f32 %v1269_v62, %v1269_v62  ;;  %v2304_v59 = vpack.c.bf16 %v2857_v46, %v2851_v35  ;;  %v2868_v4 = vadd.f32 %v2693_v39, %v1012_v51 }
 0x11a   : > { %2328 = vst [vmem:[%s2703_s12 + $0x68] sm:$0xff] %v2224_v12   ;;  %v2219_v19 = vpack.c.bf16 %v1267_v13, %v1266_v57  ;;  %v1720_v25 = vmul.f32 %v1267_v13, %v1267_v13  ;;  %v1782_v28 = vadd.f32 %v1781_v22, %v1719_v21  ;;  %v1650_v29 = vadd.f32 %v1649_v18, %v1267_v13  ;;  %v2456_v5 = vpop.f32.mrf.mxu1 }
 0x11b   : > { %v897_v33 = vpop.f32.mrf.mxu0  ;;  %v1272_v47 = vadd.f32 %v2424_v23, %v2693_v39  ;;  %2344 = vst [vmem:[%s2703_s12 + $0xe8] sm:$0xff] %v2304_v59   ;;  %v2299_v13 = vpack.c.bf16 %v2868_v4, %v2862_v49  ;;  %v2875_v22 = vadd.f32 %v2456_v5, %v2693_v39  ;;  %v1731_v5 = vmul.f32 %v2742_v34, %v2742_v34 }
 0x11c   : > { %2327 = vst [vmem:[%s2703_s12 + $0x60] sm:$0xff] %v2219_v19   ;;  %v1651_v38 = vadd.f32 %v1650_v29, %v1268_v61  ;;  %v1783_v41 = vadd.f32 %v1782_v28, %v1720_v25  ;;  %v1270_v42 = vadd.f32 %v2693_v39, %v897_v33  ;;  %v1025_v15 = vpop.f32.mrf.mxu1 }
 0x11d   : > { %v2425_v45 = vpop.f32.mrf.mxu0  ;;  %2343 = vst [vmem:[%s2703_s12 + $0xe0] sm:$0xff] %v2299_v13   ;;  %v1725_v19 = vmul.f32 %v1272_v47, %v1272_v47  ;;  %v2883_v28 = vadd.f32 %v2693_v39, %v1025_v15 }
 0x11e   : > { %v1273_v48 = vadd.f32 %v2425_v45, %v2693_v39  ;;  %v1784_v54 = vadd.f32 %v1783_v41, %v1721_v36  ;;  %v1652_v55 = vadd.f32 %v1651_v38, %v1269_v62  ;;  %v1723_v10 = vmul.f32 %v1270_v42, %v1270_v42  ;;  %v2457_v23 = vpop.f32.mrf.mxu1 }
 0x11f   : > { %v900_v57 = vpop.f32.mrf.mxu0  ;;  %v2880_v27 = vadd.f32 %v2457_v23, %v2693_v39 }
 0x120   : > { %v2234_v61 = vpack.c.bf16 %v1273_v48, %v1272_v47  ;;  %v1271_v2 = vadd.f32 %v2693_v39, %v900_v57  ;;  %v1653_v7 = vadd.f32 %v1652_v55, %v1270_v42  ;;  %v1785_v11 = vadd.f32 %v1784_v54, %v1722_v52  ;;  %v1028_v29 = vpop.f32.mrf.mxu1 }
 0x121   : > { %v1726_v33 = vmul.f32 %v1273_v48, %v1273_v48  ;;  %v2314_v38 = vpack.c.bf16 %v2880_v27, %v2875_v22  ;;  %v2888_v41 = vadd.f32 %v2693_v39, %v1028_v29  ;;  %v1729_v39 = vmul.f32 %v2708_v56, %v2708_v56 }
 0x122   : > { %2330 = vst [vmem:[%s2703_s12 + $0x78] sm:$0xff] %v2234_v61   ;;  %v2229_v12 = vpack.c.bf16 %v1271_v2, %v1270_v42  ;;  %v1724_v62 = vmul.f32 %v1271_v2, %v1271_v2  ;;  %v1786_v18 = vadd.f32 %v1785_v11, %v1723_v10  ;;  %v1654_v21 = vadd.f32 %v1653_v7, %v1271_v2 }
 0x123   : > { %v1727_v42 = vmul.f32 %v2713_v0, %v2713_v0  ;;  %2346 = vst [vmem:[%s2703_s12 + $0xf8] sm:$0xff] %v2314_v38   ;;  %v2309_v51 = vpack.c.bf16 %v2888_v41, %v2883_v28  ;;  %v1732_v11 = vmul.f32 %v2748_v44, %v2748_v44 }
 0x124   : > { %2329 = vst [vmem:[%s2703_s12 + $0x70] sm:$0xff] %v2229_v12   ;;  %v1655_v25 = vadd.f32 %v1654_v21, %v1272_v47  ;;  %v1787_v26 = vadd.f32 %v1786_v18, %v1724_v62  ;;  %v1735_v18 = vmul.f32 %v2766_v6, %v2766_v6 }
 0x125   : > { %2345 = vst [vmem:[%s2703_s12 + $0xf0] sm:$0xff] %v2309_v51  }
 0x126   : > { %v1788_v36 = vadd.f32 %v1787_v26, %v1725_v19  ;;  %v1656_v37 = vadd.f32 %v1655_v25, %v1273_v48  ;;  %v1728_v48 = vmul.f32 %v2723_v9, %v2723_v9  ;;  %v1736_v19 = vmul.f32 %v2772_v16, %v2772_v16 }
 0x128   : > { %v1657_v45 = vadd.f32 %v1656_v37, %v2713_v0  ;;  %v1789_v47 = vadd.f32 %v1788_v36, %v1726_v33  ;;  %v1730_v0 = vmul.f32 %v2716_v1, %v2716_v1  ;;  %v1739_v36 = vmul.f32 %v2790_v43, %v2790_v43 }
 0x12a   : > { %v1658_v52 = vadd.f32 %v1657_v45, %v2723_v9  ;;  %v1790_v54 = vadd.f32 %v1789_v47, %v1727_v42  ;;  %v1740_v42 = vmul.f32 %v2796_v53, %v2796_v53 }
 0x12c   : > { %v1659_v55 = vadd.f32 %v1658_v52, %v2708_v56  ;;  %v1791_v57 = vadd.f32 %v1790_v54, %v1728_v48  ;;  %v1733_v56 = vmul.f32 %v2732_v24, %v2732_v24  ;;  %v1743_v48 = vmul.f32 %v2814_v20, %v2814_v20 }
 0x12e   : > { %v1792_v59 = vadd.f32 %v1791_v57, %v1729_v39  ;;  %v1660_v61 = vadd.f32 %v1659_v55, %v2716_v1  ;;  %v1734_v1 = vmul.f32 %v2737_v31, %v2737_v31  ;;  %v1744_v55 = vmul.f32 %v2820_v32, %v2820_v32 }
 0x130   : > { %v1661_v2 = vadd.f32 %v1660_v61, %v2742_v34  ;;  %v1793_v9 = vadd.f32 %v1792_v59, %v1730_v0 }
 0x132   : > { %v1794_v7 = vadd.f32 %v1793_v9, %v1731_v5  ;;  %v1662_v10 = vadd.f32 %v1661_v2, %v2748_v44  ;;  %v1747_v2 = vmul.f32 %v2838_v63, %v2838_v63 }
 0x134   : > { %v1663_v12 = vadd.f32 %v1662_v10, %v2732_v24  ;;  %v1795_v62 = vadd.f32 %v1794_v7, %v1732_v11  ;;  %v1737_v24 = vmul.f32 %v2755_v58, %v2755_v58  ;;  %v1748_v7 = vmul.f32 %v2844_v14, %v2844_v14 }
 0x136   : > { %v1796_v13 = vadd.f32 %v1795_v62, %v1733_v56  ;;  %v1664_v15 = vadd.f32 %v1663_v12, %v2737_v31  ;;  %v1738_v31 = vmul.f32 %v2761_v3, %v2761_v3  ;;  %v1751_v62 = vmul.f32 %v2862_v49, %v2862_v49 }
 0x138   : > { %v1665_v34 = vadd.f32 %v1664_v15, %v2766_v6  ;;  %v1797_v21 = vadd.f32 %v1796_v13, %v1734_v1  ;;  %v1752_v15 = vmul.f32 %v2868_v4, %v2868_v4 }
 0x13a   : > { %v1798_v23 = vadd.f32 %v1797_v21, %v1735_v18  ;;  %v1666_v44 = vadd.f32 %v1665_v34, %v2772_v16 }
 0x13c   : > { %v1667_v25 = vadd.f32 %v1666_v44, %v2755_v58  ;;  %v1799_v26 = vadd.f32 %v1798_v23, %v1736_v19  ;;  %v1741_v58 = vmul.f32 %v2779_v30, %v2779_v30  ;;  %v1755_v44 = vmul.f32 %v2883_v28, %v2883_v28 }
 0x13e   : > { %v1800_v29 = vadd.f32 %v1799_v26, %v1737_v24  ;;  %v1668_v33 = vadd.f32 %v1667_v25, %v2761_v3  ;;  %v1742_v3 = vmul.f32 %v2785_v40, %v2785_v40  ;;  %v1757_v25 = vmul.f32 %v2875_v22, %v2875_v22 }
 0x140   : > { %v1669_v6 = vadd.f32 %v1668_v33, %v2790_v43  ;;  %v1801_v37 = vadd.f32 %v1800_v29, %v1738_v31 }
 0x142   : > { %v1802_v38 = vadd.f32 %v1801_v37, %v1739_v36  ;;  %v1670_v16 = vadd.f32 %v1669_v6, %v2796_v53 }
 0x144   : > { %v1671_v45 = vadd.f32 %v1670_v16, %v2779_v30  ;;  %v1803_v47 = vadd.f32 %v1802_v38, %v1740_v42  ;;  %v1745_v30 = vmul.f32 %v2803_v8, %v2803_v8 }
 0x146   : > { %v1804_v51 = vadd.f32 %v1803_v47, %v1741_v58  ;;  %v1672_v52 = vadd.f32 %v1671_v45, %v2785_v40  ;;  %v1746_v40 = vmul.f32 %v2809_v17, %v2809_v17 }
 0x148   : > { %v1673_v43 = vadd.f32 %v1672_v52, %v2814_v20  ;;  %v1805_v54 = vadd.f32 %v1804_v51, %v1742_v3 }
 0x14a   : > { %v1806_v39 = vadd.f32 %v1805_v54, %v1743_v48  ;;  %v1674_v53 = vadd.f32 %v1673_v43, %v2820_v32 }
 0x14c   : > { %v1675_v57 = vadd.f32 %v1674_v53, %v2803_v8  ;;  %v1807_v0 = vadd.f32 %v1806_v39, %v1744_v55  ;;  %v1749_v8 = vmul.f32 %v2827_v50, %v2827_v50 }
 0x14e   : > { %v1808_v59 = vadd.f32 %v1807_v0, %v1745_v30  ;;  %v1676_v61 = vadd.f32 %v1675_v57, %v2809_v17  ;;  %v1750_v17 = vmul.f32 %v2833_v60, %v2833_v60 }
 0x150   : > { %v1677_v20 = vadd.f32 %v1676_v61, %v2838_v63  ;;  %v1809_v5 = vadd.f32 %v1808_v59, %v1746_v40 }
 0x152   : > { %v1810_v9 = vadd.f32 %v1809_v5, %v1747_v2  ;;  %v1678_v32 = vadd.f32 %v1677_v20, %v2844_v14 }
 0x154   : > { %v1679_v10 = vadd.f32 %v1678_v32, %v2827_v50  ;;  %v1811_v11 = vadd.f32 %v1810_v9, %v1748_v7  ;;  %v1753_v50 = vmul.f32 %v2851_v35, %v2851_v35 }
 0x156   : > { %v1812_v56 = vadd.f32 %v1811_v11, %v1749_v8  ;;  %v1680_v12 = vadd.f32 %v1679_v10, %v2833_v60  ;;  %v1754_v60 = vmul.f32 %v2857_v46, %v2857_v46 }
 0x158   : > { %v1681_v63 = vadd.f32 %v1680_v12, %v2862_v49  ;;  %v1813_v1 = vadd.f32 %v1812_v56, %v1750_v17 }
 0x15a   : > { %v1814_v13 = vadd.f32 %v1813_v1, %v1751_v62  ;;  %v1682_v14 = vadd.f32 %v1681_v63, %v2868_v4 }
 0x15c   : > { %v1683_v34 = vadd.f32 %v1682_v14, %v2851_v35  ;;  %v1815_v18 = vadd.f32 %v1814_v13, %v1752_v15  ;;  %v1756_v35 = vmul.f32 %v2888_v41, %v2888_v41 }
 0x15e   : > { %v1816_v21 = vadd.f32 %v1815_v18, %v1753_v50  ;;  %v1684_v49 = vadd.f32 %v1683_v34, %v2857_v46  ;;  %v1758_v46 = vmul.f32 %v2880_v27, %v2880_v27 }
 0x160   : > { %v1685_v23 = vadd.f32 %v1684_v49, %v2883_v28  ;;  %v1817_v19 = vadd.f32 %v1816_v21, %v1754_v60 }
 0x162   : > { %v1818_v4 = vadd.f32 %v1817_v19, %v1755_v44  ;;  %v1686_v24 = vadd.f32 %v1685_v23, %v2888_v41 }
 0x164   : > { %v1687_v26 = vadd.f32 %v1686_v24, %v2875_v22  ;;  %v1819_v31 = vadd.f32 %v1818_v4, %v1756_v35 }
 0x166   : > { %v1688_v29 = vadd.f32 %v1687_v26, %v2880_v27  ;;  %v1820_v28 = vadd.f32 %v1819_v31, %v1757_v25 }
 0x168   : > { %v1689_v33 = vrot.slane %v1688_v29, 4  ;;  %v1821_v6 = vadd.f32 %v1820_v28, %v1758_v46 }
 0x16a   : > { %v1690_v36 = vadd.f32 %v1689_v33, %v1688_v29  ;;  %v1822_v37 = vrot.slane %v1821_v6, 4 }
 0x16c   : > { %v1691_v38 = vrot.slane %v1690_v36, 2  ;;  %v1823_v16 = vadd.f32 %v1822_v37, %v1821_v6 }
 0x16e   : > { %v1692_v41 = vadd.f32 %v1691_v38, %v1690_v36  ;;  %v1824_v42 = vrot.slane %v1823_v16, 2 }
 0x170   : > { %v1693_v58 = vrot.slane %v1692_v41, 1  ;;  %v1825_v45 = vadd.f32 %v1824_v42, %v1823_v16 }
 0x172   : > { %v1826_v22 = vrot.slane %v1825_v45, 1  ;;  %v1694_v27 = vadd.f32 %v1693_v58, %v1692_v41 }
 0x174   : > { %v1827_v47 = vadd.f32 %v1826_v22, %v1825_v45 }
 0x176   : > { %v1829_v3 = vsel %vm1828_vm2, %v1694_v27, %v1827_v47 }
 0x177   : > { %1830 = vst [vmem:[%s256_s20] sm:$0x3] %v1829_v3 }
 0x178 PF: > { %s15_s17 = sadd.s32 1, %s2553_s17   ;;  %s3009_s15 = smov %s2549_s16 }
 0x179   : > { %p12_p6 = scmp.ge.s32.totalorder %s15_s17, 6   ;;  %s3010_s16 = smov %s3012_s18 }
 0x17b   :  { %14 = sbr.rel (!%p12_p6) target bundleno = 2 (0x2), region = 85 }

// kernel: decoder_block.7
= control target key start
LH: loop header
LB: loop body
LE: loop exit
PB: predicated region body
PF: predicated region fallthrough
CT: control target
= control target key end

     0   :  { %s836_s12 = smov 0   ;;  %s1095_s0 = inlined_call_operand.vmem [shape: bf16[2048,128], index: 0, kind: input, shape index: {}]   ;;  %s1096_s1 = inlined_call_operand.vmem [shape: f32[1,128], index: 1, kind: input, shape index: {}]   ;;  %s1097_s2 = inlined_call_operand.vmem [shape: f32[1,128], index: 2, kind: input, shape index: {}]   ;;  %s1098_s3 = inlined_call_operand.vmem [shape: f32[2048,128], index: 3, kind: output, shape index: {}]  }
   0x1 LB: > { %s628_s13 = sadd.s32 4294967295, %s814_s12   ;;  %p632_p0 = scmp.ge.s32.totalorder %s814_s12, 1  ;;  %s814_s12 = sphi %s836_s12, %s13_s12  }
   0x2   : > { %p138_p1 = scmp.lt.s32.totalorder %s814_s12, 5 }
   0x4   : > { %p139_p2 = pnand %p632_p0, %p138_p1 }
   0x5   : > { %s633_s14 = sshll.u32 (!%p139_p2), %s628_s13, 6 }
   0x6   : > { %142 = sbr.rel (%p139_p2) target bundleno = 83 (0x53), region = 32  ;;  %p163_p3 = scmp.lt.s32.totalorder (!%p139_p2), %s633_s14, 255 }
   0xb   : > { %s1100_s14 = smov (!%p163_p3, %s633_s14), 255  ;;  %v855_v0 = vld [vmem:[%s1096_s1] ss:$0 sm:$0xff] }
   0xc   : > { %s634_s15 = sshll.u32 %s1100_s14, 2  ;;  %v864_v9 = vld [vmem:[%s1097_s2] ss:$0 sm:$0xff]  ;;  %s636_s23 = sshll.u32 %s1100_s14, 3 }
   0xd   : > { %s850_s18 = scalar_lea.vmem %s1095_s0, %s634_s15  ;;  %s882_s26 = scalar_lea.vmem %s1098_s3, %s636_s23 }
   0xe   : > { %v642_v1 = vld [vmem:[%s850_s18] sm:$0xff]   ;;  %v769_v2 = vld [vmem:[%s850_s18 + $0x8] sm:$0xff]   ;;  %v770_v3 = vld [vmem:[%s850_s18 + $0x10] sm:$0xff]  }
   0xf   : > { %v643_v4 = vunpack.c.l.bf16 %v642_v1  ;;  %v644_v5 = vunpack.c.h.bf16 %v642_v1  ;;  %v647_v6 = vunpack.c.l.bf16 %v769_v2  ;;  %v648_v7 = vunpack.c.h.bf16 %v769_v2  ;;  %v771_v8 = vld [vmem:[%s850_s18 + $0x18] sm:$0xff]   ;;  %v772_v30 = vld [vmem:[%s850_s18 + $0x20] sm:$0xff]   ;;  %v773_v31 = vld [vmem:[%s850_s18 + $0x28] sm:$0xff]  }
  0x10   : > { %v651_v10 = vunpack.c.l.bf16 %v770_v3  ;;  %v652_v11 = vunpack.c.h.bf16 %v770_v3  ;;  %v655_v12 = vunpack.c.l.bf16 %v771_v8  ;;  %v656_v13 = vunpack.c.h.bf16 %v771_v8  ;;  %v774_v36 = vld [vmem:[%s850_s18 + $0x30] sm:$0xff]   ;;  %v775_v37 = vld [vmem:[%s850_s18 + $0x38] sm:$0xff]   ;;  %v776_v3 = vld [vmem:[%s850_s18 + $0x40] sm:$0xff]  }
  0x11   : > { %v309_v14 = vmul.f32 %v643_v4, %v855_v0  ;;  %v310_v15 = vmul.f32 %v644_v5, %v855_v0  ;;  %v311_v16 = vmul.f32 %v647_v6, %v855_v0  ;;  %v312_v17 = vmul.f32 %v648_v7, %v855_v0  ;;  %v777_v4 = vld [vmem:[%s850_s18 + $0x48] sm:$0xff]  }
  0x12   : > { %v313_v18 = vmul.f32 %v651_v10, %v855_v0  ;;  %v314_v19 = vmul.f32 %v652_v11, %v855_v0  ;;  %v315_v20 = vmul.f32 %v655_v12, %v855_v0  ;;  %v316_v21 = vmul.f32 %v656_v13, %v855_v0  ;;  %v778_v10 = vld [vmem:[%s850_s18 + $0x50] sm:$0xff]   ;;  %v779_v11 = vld [vmem:[%s850_s18 + $0x58] sm:$0xff]  }
  0x13   : > { %v380_v22 = vadd.f32 %v864_v9, %v309_v14  ;;  %v381_v23 = vadd.f32 %v864_v9, %v310_v15  ;;  %v382_v24 = vadd.f32 %v864_v9, %v311_v16  ;;  %v383_v25 = vadd.f32 %v864_v9, %v312_v17 }
  0x14   : > { %v384_v26 = vadd.f32 %v864_v9, %v313_v18  ;;  %v385_v27 = vadd.f32 %v864_v9, %v314_v19  ;;  %v386_v28 = vadd.f32 %v864_v9, %v315_v20  ;;  %v387_v29 = vadd.f32 %v864_v9, %v316_v21 }
  0x15   : > { %v444_v32 = vmax.f32 %v380_v22, 0.0  ;;  %v445_v33 = vmax.f32 %v381_v23, 0.0  ;;  %v446_v34 = vmax.f32 %v382_v24, 0.0  ;;  %v447_v35 = vmax.f32 %v383_v25, 0.0 }
  0x16   : > { %v448_v38 = vmax.f32 %v384_v26, 0.0  ;;  %v449_v39 = vmax.f32 %v385_v27, 0.0  ;;  %v450_v40 = vmax.f32 %v386_v28, 0.0  ;;  %v451_v41 = vmax.f32 %v387_v29, 0.0 }
  0x17   : > { %508 = vst [vmem:[%s882_s26] sm:$0xff] %v444_v32  ;;  %509 = vst [vmem:[%s882_s26 + $0x8] sm:$0xff] %v445_v33  ;;  %v659_v42 = vunpack.c.l.bf16 %v772_v30  ;;  %v660_v43 = vunpack.c.h.bf16 %v772_v30  ;;  %v663_v44 = vunpack.c.l.bf16 %v773_v31  ;;  %v664_v45 = vunpack.c.h.bf16 %v773_v31 }
  0x18   : > { %510 = vst [vmem:[%s882_s26 + $0x10] sm:$0xff] %v446_v34  ;;  %511 = vst [vmem:[%s882_s26 + $0x18] sm:$0xff] %v447_v35  ;;  %v667_v46 = vunpack.c.l.bf16 %v774_v36  ;;  %v668_v47 = vunpack.c.h.bf16 %v774_v36  ;;  %v671_v48 = vunpack.c.l.bf16 %v775_v37  ;;  %v672_v49 = vunpack.c.h.bf16 %v775_v37 }
  0x19   : > { %512 = vst [vmem:[%s882_s26 + $0x20] sm:$0xff] %v448_v38  ;;  %513 = vst [vmem:[%s882_s26 + $0x28] sm:$0xff] %v449_v39  ;;  %v317_v50 = vmul.f32 %v659_v42, %v855_v0  ;;  %v318_v51 = vmul.f32 %v660_v43, %v855_v0  ;;  %v319_v52 = vmul.f32 %v663_v44, %v855_v0  ;;  %v675_v16 = vunpack.c.l.bf16 %v776_v3 }
  0x1a   : > { %514 = vst [vmem:[%s882_s26 + $0x30] sm:$0xff] %v450_v40  ;;  %515 = vst [vmem:[%s882_s26 + $0x38] sm:$0xff] %v451_v41  ;;  %v320_v53 = vmul.f32 %v664_v45, %v855_v0  ;;  %v321_v54 = vmul.f32 %v667_v46, %v855_v0  ;;  %v322_v55 = vmul.f32 %v668_v47, %v855_v0  ;;  %v676_v17 = vunpack.c.h.bf16 %v776_v3  ;;  %v780_v40 = vld [vmem:[%s850_s18 + $0x60] sm:$0xff]   ;;  %v781_v41 = vld [vmem:[%s850_s18 + $0x68] sm:$0xff]  }
  0x1b   : > { %v323_v56 = vmul.f32 %v671_v48, %v855_v0  ;;  %v324_v57 = vmul.f32 %v672_v49, %v855_v0  ;;  %v388_v58 = vadd.f32 %v864_v9, %v317_v50  ;;  %v389_v59 = vadd.f32 %v864_v9, %v318_v51  ;;  %v782_v46 = vld [vmem:[%s850_s18 + $0x70] sm:$0xff]   ;;  %v783_v47 = vld [vmem:[%s850_s18 + $0x78] sm:$0xff]  }
  0x1c   : > { %v390_v60 = vadd.f32 %v864_v9, %v319_v52  ;;  %v391_v61 = vadd.f32 %v864_v9, %v320_v53  ;;  %v392_v62 = vadd.f32 %v864_v9, %v321_v54  ;;  %v393_v63 = vadd.f32 %v864_v9, %v322_v55 }
  0x1d   : > { %v394_v1 = vadd.f32 %v864_v9, %v323_v56  ;;  %v395_v2 = vadd.f32 %v864_v9, %v324_v57  ;;  %v452_v5 = vmax.f32 %v388_v58, 0.0  ;;  %v453_v6 = vmax.f32 %v389_v59, 0.0 }
  0x1e   : > { %v454_v7 = vmax.f32 %v390_v60, 0.0  ;;  %v455_v8 = vmax.f32 %v391_v61, 0.0  ;;  %v456_v12 = vmax.f32 %v392_v62, 0.0  ;;  %v457_v13 = vmax.f32 %v393_v63, 0.0 }
  0x1f   : > { %v458_v14 = vmax.f32 %v394_v1, 0.0  ;;  %v459_v15 = vmax.f32 %v395_v2, 0.0  ;;  %516 = vst [vmem:[%s882_s26 + $0x40] sm:$0xff] %v452_v5  ;;  %517 = vst [vmem:[%s882_s26 + $0x48] sm:$0xff] %v453_v6  ;;  %v679_v18 = vunpack.c.l.bf16 %v777_v4  ;;  %v680_v19 = vunpack.c.h.bf16 %v777_v4 }
  0x20   : > { %518 = vst [vmem:[%s882_s26 + $0x50] sm:$0xff] %v454_v7  ;;  %519 = vst [vmem:[%s882_s26 + $0x58] sm:$0xff] %v455_v8  ;;  %v683_v20 = vunpack.c.l.bf16 %v778_v10  ;;  %v684_v21 = vunpack.c.h.bf16 %v778_v10  ;;  %v687_v22 = vunpack.c.l.bf16 %v779_v11  ;;  %v688_v23 = vunpack.c.h.bf16 %v779_v11 }
  0x21   : > { %520 = vst [vmem:[%s882_s26 + $0x60] sm:$0xff] %v456_v12  ;;  %521 = vst [vmem:[%s882_s26 + $0x68] sm:$0xff] %v457_v13  ;;  %v325_v24 = vmul.f32 %v675_v16, %v855_v0  ;;  %v326_v25 = vmul.f32 %v676_v17, %v855_v0  ;;  %v327_v26 = vmul.f32 %v679_v18, %v855_v0  ;;  %v691_v52 = vunpack.c.l.bf16 %v780_v40 }
  0x22   : > { %522 = vst [vmem:[%s882_s26 + $0x70] sm:$0xff] %v458_v14  ;;  %523 = vst [vmem:[%s882_s26 + $0x78] sm:$0xff] %v459_v15  ;;  %v328_v27 = vmul.f32 %v680_v19, %v855_v0  ;;  %v329_v28 = vmul.f32 %v683_v20, %v855_v0  ;;  %v330_v29 = vmul.f32 %v684_v21, %v855_v0  ;;  %v692_v53 = vunpack.c.h.bf16 %v780_v40  ;;  %v784_v14 = vld [vmem:[%s850_s18 + $0x80] sm:$0xff]   ;;  %v785_v15 = vld [vmem:[%s850_s18 + $0x88] sm:$0xff]  }
  0x23   : > { %v331_v30 = vmul.f32 %v687_v22, %v855_v0  ;;  %v332_v31 = vmul.f32 %v688_v23, %v855_v0  ;;  %v396_v32 = vadd.f32 %v864_v9, %v325_v24  ;;  %v397_v33 = vadd.f32 %v864_v9, %v326_v25  ;;  %v786_v20 = vld [vmem:[%s850_s18 + $0x90] sm:$0xff]   ;;  %v787_v21 = vld [vmem:[%s850_s18 + $0x98] sm:$0xff]  }
  0x24   : > { %v398_v34 = vadd.f32 %v864_v9, %v327_v26  ;;  %v399_v35 = vadd.f32 %v864_v9, %v328_v27  ;;  %v400_v36 = vadd.f32 %v864_v9, %v329_v28  ;;  %v401_v37 = vadd.f32 %v864_v9, %v330_v29 }
  0x25   : > { %v402_v38 = vadd.f32 %v864_v9, %v331_v30  ;;  %v403_v39 = vadd.f32 %v864_v9, %v332_v31  ;;  %v460_v42 = vmax.f32 %v396_v32, 0.0  ;;  %v461_v43 = vmax.f32 %v397_v33, 0.0 }
  0x26   : > { %v462_v44 = vmax.f32 %v398_v34, 0.0  ;;  %v463_v45 = vmax.f32 %v399_v35, 0.0  ;;  %v464_v48 = vmax.f32 %v400_v36, 0.0  ;;  %v465_v49 = vmax.f32 %v401_v37, 0.0 }
  0x27   : > { %v466_v50 = vmax.f32 %v402_v38, 0.0  ;;  %v467_v51 = vmax.f32 %v403_v39, 0.0  ;;  %524 = vst [vmem:[%s882_s26 + $0x80] sm:$0xff] %v460_v42  ;;  %525 = vst [vmem:[%s882_s26 + $0x88] sm:$0xff] %v461_v43  ;;  %v695_v54 = vunpack.c.l.bf16 %v781_v41  ;;  %v696_v55 = vunpack.c.h.bf16 %v781_v41 }
  0x28   : > { %526 = vst [vmem:[%s882_s26 + $0x90] sm:$0xff] %v462_v44  ;;  %527 = vst [vmem:[%s882_s26 + $0x98] sm:$0xff] %v463_v45  ;;  %v699_v56 = vunpack.c.l.bf16 %v782_v46  ;;  %v700_v57 = vunpack.c.h.bf16 %v782_v46  ;;  %v703_v58 = vunpack.c.l.bf16 %v783_v47  ;;  %v704_v59 = vunpack.c.h.bf16 %v783_v47 }
  0x29   : > { %528 = vst [vmem:[%s882_s26 + $0xa0] sm:$0xff] %v464_v48  ;;  %529 = vst [vmem:[%s882_s26 + $0xa8] sm:$0xff] %v465_v49  ;;  %v333_v60 = vmul.f32 %v691_v52, %v855_v0  ;;  %v334_v61 = vmul.f32 %v692_v53, %v855_v0  ;;  %v335_v62 = vmul.f32 %v695_v54, %v855_v0  ;;  %v707_v26 = vunpack.c.l.bf16 %v784_v14 }
  0x2a   : > { %530 = vst [vmem:[%s882_s26 + $0xb0] sm:$0xff] %v466_v50  ;;  %531 = vst [vmem:[%s882_s26 + $0xb8] sm:$0xff] %v467_v51  ;;  %v336_v63 = vmul.f32 %v696_v55, %v855_v0  ;;  %v337_v1 = vmul.f32 %v699_v56, %v855_v0  ;;  %v338_v2 = vmul.f32 %v700_v57, %v855_v0  ;;  %v708_v27 = vunpack.c.h.bf16 %v784_v14  ;;  %v788_v50 = vld [vmem:[%s850_s18 + $0xa0] sm:$0xff]   ;;  %v789_v51 = vld [vmem:[%s850_s18 + $0xa8] sm:$0xff]  }
  0x2b   : > { %v339_v3 = vmul.f32 %v703_v58, %v855_v0  ;;  %v340_v4 = vmul.f32 %v704_v59, %v855_v0  ;;  %v404_v5 = vadd.f32 %v864_v9, %v333_v60  ;;  %v405_v6 = vadd.f32 %v864_v9, %v334_v61  ;;  %v790_v56 = vld [vmem:[%s850_s18 + $0xb0] sm:$0xff]   ;;  %v791_v57 = vld [vmem:[%s850_s18 + $0xb8] sm:$0xff]  }
  0x2c   : > { %v406_v7 = vadd.f32 %v864_v9, %v335_v62  ;;  %v407_v8 = vadd.f32 %v864_v9, %v336_v63  ;;  %v408_v10 = vadd.f32 %v864_v9, %v337_v1  ;;  %v409_v11 = vadd.f32 %v864_v9, %v338_v2 }
  0x2d   : > { %v410_v12 = vadd.f32 %v864_v9, %v339_v3  ;;  %v411_v13 = vadd.f32 %v864_v9, %v340_v4  ;;  %v468_v16 = vmax.f32 %v404_v5, 0.0  ;;  %v469_v17 = vmax.f32 %v405_v6, 0.0 }
  0x2e   : > { %v470_v18 = vmax.f32 %v406_v7, 0.0  ;;  %v471_v19 = vmax.f32 %v407_v8, 0.0  ;;  %v472_v22 = vmax.f32 %v408_v10, 0.0  ;;  %v473_v23 = vmax.f32 %v409_v11, 0.0 }
  0x2f   : > { %v474_v24 = vmax.f32 %v410_v12, 0.0  ;;  %v475_v25 = vmax.f32 %v411_v13, 0.0  ;;  %532 = vst [vmem:[%s882_s26 + $0xc0] sm:$0xff] %v468_v16  ;;  %533 = vst [vmem:[%s882_s26 + $0xc8] sm:$0xff] %v469_v17  ;;  %v711_v28 = vunpack.c.l.bf16 %v785_v15  ;;  %v712_v29 = vunpack.c.h.bf16 %v785_v15 }
  0x30   : > { %534 = vst [vmem:[%s882_s26 + $0xd0] sm:$0xff] %v470_v18  ;;  %535 = vst [vmem:[%s882_s26 + $0xd8] sm:$0xff] %v471_v19  ;;  %v715_v30 = vunpack.c.l.bf16 %v786_v20  ;;  %v716_v31 = vunpack.c.h.bf16 %v786_v20  ;;  %v719_v32 = vunpack.c.l.bf16 %v787_v21  ;;  %v720_v33 = vunpack.c.h.bf16 %v787_v21 }
  0x31   : > { %536 = vst [vmem:[%s882_s26 + $0xe0] sm:$0xff] %v472_v22  ;;  %537 = vst [vmem:[%s882_s26 + $0xe8] sm:$0xff] %v473_v23  ;;  %v341_v34 = vmul.f32 %v707_v26, %v855_v0  ;;  %v342_v35 = vmul.f32 %v708_v27, %v855_v0  ;;  %v343_v36 = vmul.f32 %v711_v28, %v855_v0  ;;  %v723_v62 = vunpack.c.l.bf16 %v788_v50 }
  0x32   : > { %538 = vst [vmem:[%s882_s26 + $0xf0] sm:$0xff] %v474_v24  ;;  %539 = vst [vmem:[%s882_s26 + $0xf8] sm:$0xff] %v475_v25  ;;  %v344_v37 = vmul.f32 %v712_v29, %v855_v0  ;;  %v345_v38 = vmul.f32 %v715_v30, %v855_v0  ;;  %v346_v39 = vmul.f32 %v716_v31, %v855_v0  ;;  %v724_v63 = vunpack.c.h.bf16 %v788_v50  ;;  %v792_v24 = vld [vmem:[%s850_s18 + $0xc0] sm:$0xff]   ;;  %v793_v25 = vld [vmem:[%s850_s18 + $0xc8] sm:$0xff]  }
  0x33   : > { %v347_v40 = vmul.f32 %v719_v32, %v855_v0  ;;  %v348_v41 = vmul.f32 %v720_v33, %v855_v0  ;;  %v412_v42 = vadd.f32 %v864_v9, %v341_v34  ;;  %v413_v43 = vadd.f32 %v864_v9, %v342_v35  ;;  %v794_v30 = vld [vmem:[%s850_s18 + $0xd0] sm:$0xff]   ;;  %v795_v31 = vld [vmem:[%s850_s18 + $0xd8] sm:$0xff]  }
  0x34   : > { %v414_v44 = vadd.f32 %v864_v9, %v343_v36  ;;  %v415_v45 = vadd.f32 %v864_v9, %v344_v37  ;;  %v416_v46 = vadd.f32 %v864_v9, %v345_v38  ;;  %v417_v47 = vadd.f32 %v864_v9, %v346_v39 }
  0x35   : > { %v418_v48 = vadd.f32 %v864_v9, %v347_v40  ;;  %v419_v49 = vadd.f32 %v864_v9, %v348_v41  ;;  %v476_v52 = vmax.f32 %v412_v42, 0.0  ;;  %v477_v53 = vmax.f32 %v413_v43, 0.0 }
  0x36   : > { %v478_v54 = vmax.f32 %v414_v44, 0.0  ;;  %v479_v55 = vmax.f32 %v415_v45, 0.0  ;;  %v480_v58 = vmax.f32 %v416_v46, 0.0  ;;  %v481_v59 = vmax.f32 %v417_v47, 0.0 }
  0x37   : > { %v482_v60 = vmax.f32 %v418_v48, 0.0  ;;  %v483_v61 = vmax.f32 %v419_v49, 0.0  ;;  %540 = vst [vmem:[%s882_s26 + $0x100] sm:$0xff] %v476_v52  ;;  %541 = vst [vmem:[%s882_s26 + $0x108] sm:$0xff] %v477_v53  ;;  %v727_v1 = vunpack.c.l.bf16 %v789_v51  ;;  %v728_v2 = vunpack.c.h.bf16 %v789_v51 }
  0x38   : > { %542 = vst [vmem:[%s882_s26 + $0x110] sm:$0xff] %v478_v54  ;;  %543 = vst [vmem:[%s882_s26 + $0x118] sm:$0xff] %v479_v55  ;;  %v731_v3 = vunpack.c.l.bf16 %v790_v56  ;;  %v732_v4 = vunpack.c.h.bf16 %v790_v56  ;;  %v735_v5 = vunpack.c.l.bf16 %v791_v57  ;;  %v736_v6 = vunpack.c.h.bf16 %v791_v57 }
  0x39   : > { %544 = vst [vmem:[%s882_s26 + $0x120] sm:$0xff] %v480_v58  ;;  %545 = vst [vmem:[%s882_s26 + $0x128] sm:$0xff] %v481_v59  ;;  %v349_v7 = vmul.f32 %v723_v62, %v855_v0  ;;  %v350_v8 = vmul.f32 %v724_v63, %v855_v0  ;;  %v351_v10 = vmul.f32 %v727_v1, %v855_v0  ;;  %v739_v36 = vunpack.c.l.bf16 %v792_v24 }
  0x3a   : > { %546 = vst [vmem:[%s882_s26 + $0x130] sm:$0xff] %v482_v60  ;;  %547 = vst [vmem:[%s882_s26 + $0x138] sm:$0xff] %v483_v61  ;;  %v352_v11 = vmul.f32 %v728_v2, %v855_v0  ;;  %v353_v12 = vmul.f32 %v731_v3, %v855_v0  ;;  %v354_v13 = vmul.f32 %v732_v4, %v855_v0  ;;  %v740_v37 = vunpack.c.h.bf16 %v792_v24  ;;  %v796_v60 = vld [vmem:[%s850_s18 + $0xe0] sm:$0xff]   ;;  %v797_v61 = vld [vmem:[%s850_s18 + $0xe8] sm:$0xff]  }
  0x3b   : > { %v355_v14 = vmul.f32 %v735_v5, %v855_v0  ;;  %v356_v15 = vmul.f32 %v736_v6, %v855_v0  ;;  %v420_v16 = vadd.f32 %v864_v9, %v349_v7  ;;  %v421_v17 = vadd.f32 %v864_v9, %v350_v8  ;;  %v798_v3 = vld [vmem:[%s850_s18 + $0xf0] sm:$0xff]   ;;  %v799_v4 = vld [vmem:[%s850_s18 + $0xf8] sm:$0xff]  }
  0x3c   : > { %v422_v18 = vadd.f32 %v864_v9, %v351_v10  ;;  %v423_v19 = vadd.f32 %v864_v9, %v352_v11  ;;  %v424_v20 = vadd.f32 %v864_v9, %v353_v12  ;;  %v425_v21 = vadd.f32 %v864_v9, %v354_v13 }
  0x3d   : > { %v426_v22 = vadd.f32 %v864_v9, %v355_v14  ;;  %v427_v23 = vadd.f32 %v864_v9, %v356_v15  ;;  %v484_v26 = vmax.f32 %v420_v16, 0.0  ;;  %v485_v27 = vmax.f32 %v421_v17, 0.0 }
  0x3e   : > { %v486_v28 = vmax.f32 %v422_v18, 0.0  ;;  %v487_v29 = vmax.f32 %v423_v19, 0.0  ;;  %v488_v32 = vmax.f32 %v424_v20, 0.0  ;;  %v489_v33 = vmax.f32 %v425_v21, 0.0 }
  0x3f   : > { %v490_v34 = vmax.f32 %v426_v22, 0.0  ;;  %v491_v35 = vmax.f32 %v427_v23, 0.0  ;;  %548 = vst [vmem:[%s882_s26 + $0x140] sm:$0xff] %v484_v26  ;;  %549 = vst [vmem:[%s882_s26 + $0x148] sm:$0xff] %v485_v27  ;;  %v743_v38 = vunpack.c.l.bf16 %v793_v25  ;;  %v744_v39 = vunpack.c.h.bf16 %v793_v25 }
  0x40   : > { %550 = vst [vmem:[%s882_s26 + $0x150] sm:$0xff] %v486_v28  ;;  %551 = vst [vmem:[%s882_s26 + $0x158] sm:$0xff] %v487_v29  ;;  %v747_v40 = vunpack.c.l.bf16 %v794_v30  ;;  %v748_v41 = vunpack.c.h.bf16 %v794_v30  ;;  %v751_v42 = vunpack.c.l.bf16 %v795_v31  ;;  %v752_v43 = vunpack.c.h.bf16 %v795_v31 }
  0x41   : > { %552 = vst [vmem:[%s882_s26 + $0x160] sm:$0xff] %v488_v32  ;;  %553 = vst [vmem:[%s882_s26 + $0x168] sm:$0xff] %v489_v33  ;;  %v357_v44 = vmul.f32 %v739_v36, %v855_v0  ;;  %v358_v45 = vmul.f32 %v740_v37, %v855_v0  ;;  %v359_v46 = vmul.f32 %v743_v38, %v855_v0  ;;  %v755_v10 = vunpack.c.l.bf16 %v796_v60 }
  0x42   : > { %554 = vst [vmem:[%s882_s26 + $0x170] sm:$0xff] %v490_v34  ;;  %555 = vst [vmem:[%s882_s26 + $0x178] sm:$0xff] %v491_v35  ;;  %v360_v47 = vmul.f32 %v744_v39, %v855_v0  ;;  %v361_v48 = vmul.f32 %v747_v40, %v855_v0  ;;  %v362_v49 = vmul.f32 %v748_v41, %v855_v0  ;;  %v756_v11 = vunpack.c.h.bf16 %v796_v60 }
  0x43   : > { %v363_v50 = vmul.f32 %v751_v42, %v855_v0  ;;  %v364_v51 = vmul.f32 %v752_v43, %v855_v0  ;;  %v428_v52 = vadd.f32 %v864_v9, %v357_v44  ;;  %v429_v53 = vadd.f32 %v864_v9, %v358_v45 }
  0x44   : > { %v430_v54 = vadd.f32 %v864_v9, %v359_v46  ;;  %v431_v55 = vadd.f32 %v864_v9, %v360_v47  ;;  %v432_v56 = vadd.f32 %v864_v9, %v361_v48  ;;  %v433_v57 = vadd.f32 %v864_v9, %v362_v49 }
  0x45   : > { %v434_v58 = vadd.f32 %v864_v9, %v363_v50  ;;  %v435_v59 = vadd.f32 %v864_v9, %v364_v51  ;;  %v492_v62 = vmax.f32 %v428_v52, 0.0  ;;  %v493_v63 = vmax.f32 %v429_v53, 0.0 }
  0x46   : > { %v494_v1 = vmax.f32 %v430_v54, 0.0  ;;  %v495_v2 = vmax.f32 %v431_v55, 0.0  ;;  %v496_v5 = vmax.f32 %v432_v56, 0.0  ;;  %v497_v6 = vmax.f32 %v433_v57, 0.0 }
  0x47   : > { %v498_v7 = vmax.f32 %v434_v58, 0.0  ;;  %v499_v8 = vmax.f32 %v435_v59, 0.0  ;;  %556 = vst [vmem:[%s882_s26 + $0x180] sm:$0xff] %v492_v62  ;;  %557 = vst [vmem:[%s882_s26 + $0x188] sm:$0xff] %v493_v63  ;;  %v759_v12 = vunpack.c.l.bf16 %v797_v61  ;;  %v760_v13 = vunpack.c.h.bf16 %v797_v61 }
  0x48   : > { %558 = vst [vmem:[%s882_s26 + $0x190] sm:$0xff] %v494_v1  ;;  %559 = vst [vmem:[%s882_s26 + $0x198] sm:$0xff] %v495_v2  ;;  %v763_v14 = vunpack.c.l.bf16 %v798_v3  ;;  %v764_v15 = vunpack.c.h.bf16 %v798_v3  ;;  %v767_v16 = vunpack.c.l.bf16 %v799_v4  ;;  %v768_v17 = vunpack.c.h.bf16 %v799_v4 }
  0x49   : > { %560 = vst [vmem:[%s882_s26 + $0x1a0] sm:$0xff] %v496_v5  ;;  %561 = vst [vmem:[%s882_s26 + $0x1a8] sm:$0xff] %v497_v6  ;;  %v365_v18 = vmul.f32 %v755_v10, %v855_v0  ;;  %v366_v19 = vmul.f32 %v756_v11, %v855_v0  ;;  %v367_v20 = vmul.f32 %v759_v12, %v855_v0 }
  0x4a   : > { %562 = vst [vmem:[%s882_s26 + $0x1b0] sm:$0xff] %v498_v7  ;;  %563 = vst [vmem:[%s882_s26 + $0x1b8] sm:$0xff] %v499_v8  ;;  %v368_v21 = vmul.f32 %v760_v13, %v855_v0  ;;  %v369_v22 = vmul.f32 %v763_v14, %v855_v0  ;;  %v370_v23 = vmul.f32 %v764_v15, %v855_v0 }
  0x4b   : > { %v371_v24 = vmul.f32 %v767_v16, %v855_v0  ;;  %v372_v25 = vmul.f32 %v768_v17, %v855_v0  ;;  %v436_v26 = vadd.f32 %v864_v9, %v365_v18  ;;  %v437_v27 = vadd.f32 %v864_v9, %v366_v19 }
  0x4c   : > { %v438_v28 = vadd.f32 %v864_v9, %v367_v20  ;;  %v439_v29 = vadd.f32 %v864_v9, %v368_v21  ;;  %v440_v30 = vadd.f32 %v864_v9, %v369_v22  ;;  %v441_v31 = vadd.f32 %v864_v9, %v370_v23 }
  0x4d   : > { %v442_v0 = vadd.f32 %v864_v9, %v371_v24  ;;  %v443_v32 = vadd.f32 %v864_v9, %v372_v25  ;;  %v500_v33 = vmax.f32 %v436_v26, 0.0  ;;  %v501_v34 = vmax.f32 %v437_v27, 0.0 }
  0x4e   : > { %v502_v35 = vmax.f32 %v438_v28, 0.0  ;;  %v503_v36 = vmax.f32 %v439_v29, 0.0  ;;  %v504_v37 = vmax.f32 %v440_v30, 0.0  ;;  %v505_v38 = vmax.f32 %v441_v31, 0.0 }
  0x4f   : > { %v506_v39 = vmax.f32 %v442_v0, 0.0  ;;  %v507_v40 = vmax.f32 %v443_v32, 0.0  ;;  %564 = vst [vmem:[%s882_s26 + $0x1c0] sm:$0xff] %v500_v33  ;;  %565 = vst [vmem:[%s882_s26 + $0x1c8] sm:$0xff] %v501_v34 }
  0x50   : > { %566 = vst [vmem:[%s882_s26 + $0x1d0] sm:$0xff] %v502_v35  ;;  %567 = vst [vmem:[%s882_s26 + $0x1d8] sm:$0xff] %v503_v36 }
  0x51   : > { %568 = vst [vmem:[%s882_s26 + $0x1e0] sm:$0xff] %v504_v37  ;;  %569 = vst [vmem:[%s882_s26 + $0x1e8] sm:$0xff] %v505_v38 }
  0x52   : > { %570 = vst [vmem:[%s882_s26 + $0x1f0] sm:$0xff] %v506_v39  ;;  %571 = vst [vmem:[%s882_s26 + $0x1f8] sm:$0xff] %v507_v40 }
  0x53 PF: > { %s13_s12 = sadd.s32 1, %s814_s12  }
  0x54   : > { %p10_p4 = scmp.ge.s32.totalorder %s13_s12, 6  }
  0x56   :  { %12 = sbr.rel (!%p10_p4) target bundleno = 1 (0x1), region = 62 }

// kernel: decoder_block.8
= control target key start
LH: loop header
LB: loop body
LE: loop exit
PB: predicated region body
PF: predicated region fallthrough
CT: control target
= control target key end

     0   :  { %s2550_s15 = smov 0   ;;  %s2552_s16 = smov 0   ;;  %s2968_s0 = inlined_call_operand.vmem [shape: bf16[2048,36], index: 0, kind: input, shape index: {}]   ;;  %s2969_s1 = inlined_call_operand.vmem [shape: bf16[36,128], index: 1, kind: input, shape index: {}]   ;;  %s2970_s2 = inlined_call_operand.vmem [shape: f32[1,128], index: 2, kind: input, shape index: {}]   ;;  %s2971_s3 = inlined_call_operand.vmem [shape: bf16[2048,128], index: 3, kind: output, shape index: {0}]   ;;  %s2972_s4 = inlined_call_operand.vmem [shape: f32[4,2,128], index: 4, kind: output, shape index: {1}]  }
   0x1   :  { %s2554_s17 = smov 0  }
   0x2 LB: > { %s27_s18 = sadd.s32 1, %s2519_s16  ;;  %p1934_p0 = scmp.ge.s32.totalorder %s2523_s17, 1  ;;  %s2523_s17 = sphi %s2554_s17, %s15_s17   ;;  %s2519_s16 = sphi %s2552_s16, %s2974_s16   ;;  %s2515_s15 = sphi %s2550_s15, %s2973_s15  }
   0x3   : > { %p29_p1 = scmp.ge.s32.totalorder %s27_s18, 4  ;;  %p194_p2 = scmp.lt.s32.totalorder %s2523_s17, 5 }
   0x5   : > { %s2976_s18 = smov (%p29_p1, %s27_s18), 0  ;;  %p195_p3 = pnand %p1934_p0, %p194_p2 }
   0x6   : > { %s1935_s23 = sshll.u32 (!%p195_p3), %s2515_s15, 6  ;;  %p253_p5 = scmp.lt.s32.totalorder (!%p195_p3), %s2515_s15, 3 }
   0x7   : > { %198 = sbr.rel (%p195_p3) target bundleno = 368 (0x170), region = 32  ;;  %p233_p4 = scmp.lt.s32.totalorder (!%p195_p3), %s1935_s23, 255 }
   0xc   : > { %v2466_v0 = vld [vmem:[%s2969_s1 + $0x10] ss:$0 sps:$4 sm:$0x33]   ;;  %vm731_vm0 = vcmask 1041408   ;;  %v2467_v1 = vld [vmem:[%s2969_s1 + $0x8] sm:$0xff]   ;;  %v2468_v3 = vld [vmem:[%s2969_s1] sm:$0xff]  }
   0xd   : > { %2440 = vmatprep.subr.msk.bf16.mxu0 %vm731_vm0, %v2466_v0  ;;  %v733_v2 = vsel %vm731_vm0, %v2466_v0, 0  ;;  %2441 = vmatprep.subr.msk.bf16.mxu1 %vm731_vm0, %v2466_v0  ;;  %s2978_s23 = smov (!%p233_p4, %s1935_s23), 255  ;;  %vm634_vm1 = vcmask 293888   ;;  %v2657_v37 = vld [vmem:[%s2970_s2] ss:$0 sm:$0xff]  ;;  %s2980_s15 = smov (!%p253_p5, %s2515_s15), 3 }
   0xe   : > { %2365 = vmatpush3.bf16.msra.mxu0 %v733_v2  ;;  %2437 = vmatpush3.bf16.msra.mxu1 %v733_v2  ;;  %s1936_s26 = sshll.u32 %s2978_s23, 2  ;;  %s1939_s9 = sshll.u32 %s2980_s15, 1  ;;  %vm1812_vm2 = vcmask 1040384  }
   0xf   : > { %2366 = vmatprep.subr.bf16.mxu0 %v2467_v1  ;;  %2435 = vmatprep.subr.bf16.mxu1 %v2467_v1  ;;  %s2588_s29 = scalar_lea.vmem %s2968_s0, %s1936_s26  ;;  %s2667_s8 = scalar_lea.vmem %s2971_s3, %s1936_s26 }
  0x10   : > { %v2469_v4 = vld [vmem:[%s2588_s29] sm:$0xff]   ;;  %v2470_v5 = vld [vmem:[%s2588_s29 + $0x8] sm:$0xff]   ;;  %v2471_v6 = vld [vmem:[%s2588_s29 + $0x10] sm:$0xff]   ;;  %s256_s12 = scalar_lea.vmem %s2972_s4, %s1939_s9 }
  0x11   : > { %2370 = vmatprep.mubr.msk.bf16.mxu0 %vm634_vm1, %v2469_v4  ;;  %v2472_v7 = vld [vmem:[%s2588_s29 + $0x18] sm:$0xff]   ;;  %v2473_v8 = vld [vmem:[%s2588_s29 + $0x20] sm:$0xff]   ;;  %v2474_v9 = vld [vmem:[%s2588_s29 + $0x28] sm:$0xff]  }
  0x12   : > { %2367 = vmatpush3.bf16.msra.mxu0 %v2467_v1  ;;  %2438 = vmatpush3.bf16.msra.mxu1 %v2467_v1  ;;  %v2475_v10 = vld [vmem:[%s2588_s29 + $0x30] sm:$0xff]   ;;  %v2485_v11 = vld [vmem:[%s2588_s29 + $0x80] sm:$0xff]   ;;  %v2486_v12 = vld [vmem:[%s2588_s29 + $0x88] sm:$0xff]  }
  0x13   : > { %2368 = vmatprep.subr.bf16.mxu0 %v2468_v3  ;;  %2436 = vmatprep.subr.bf16.mxu1 %v2468_v3  ;;  %v2487_v13 = vld [vmem:[%s2588_s29 + $0x90] sm:$0xff]   ;;  %v2488_v14 = vld [vmem:[%s2588_s29 + $0x98] sm:$0xff]   ;;  %v2489_v15 = vld [vmem:[%s2588_s29 + $0xa0] sm:$0xff]  }
  0x14   : > { %2402 = vmatprep.mubr.msk.bf16.mxu1 %vm634_vm1, %v2485_v11  ;;  %v2476_v16 = vld [vmem:[%s2588_s29 + $0x38] sm:$0xff]   ;;  %v2477_v17 = vld [vmem:[%s2588_s29 + $0x40] sm:$0xff]   ;;  %v2490_v18 = vld [vmem:[%s2588_s29 + $0xa8] sm:$0xff]  }
  0x15   : > { %v2491_v19 = vld [vmem:[%s2588_s29 + $0xb0] sm:$0xff]   ;;  %v2478_v20 = vld [vmem:[%s2588_s29 + $0x48] sm:$0xff]   ;;  %v2492_v22 = vld [vmem:[%s2588_s29 + $0xb8] sm:$0xff]  }
  0x16   : > { %2369 = vmatpush3.bf16.msra.mxu0 %v2468_v3  ;;  %2439 = vmatpush3.bf16.msra.mxu1 %v2468_v3  ;;  %v2479_v21 = vld [vmem:[%s2588_s29 + $0x50] sm:$0xff]   ;;  %v2493_v23 = vld [vmem:[%s2588_s29 + $0xc0] sm:$0xff]   ;;  %v2480_v24 = vld [vmem:[%s2588_s29 + $0x58] sm:$0xff]  }
  0x17   : > { %v2481_v25 = vld [vmem:[%s2588_s29 + $0x60] sm:$0xff]   ;;  %v2494_v26 = vld [vmem:[%s2588_s29 + $0xc8] sm:$0xff]   ;;  %v2495_v27 = vld [vmem:[%s2588_s29 + $0xd0] sm:$0xff]  }
  0x18   : > { %v2482_v28 = vld [vmem:[%s2588_s29 + $0x68] sm:$0xff]   ;;  %v2483_v29 = vld [vmem:[%s2588_s29 + $0x70] sm:$0xff]   ;;  %v2496_v30 = vld [vmem:[%s2588_s29 + $0xd8] sm:$0xff]  }
  0x19   : > { %2371 = vmatmul.mubr.msk.bf16.vlgmr.msra.gmra.mxu0 %vm634_vm1, %v2470_v5  ;;  %2403 = vmatmul.mubr.msk.bf16.vlgmr.msra.gmra.mxu1 %vm634_vm1, %v2486_v12  ;;  %v2497_v31 = vld [vmem:[%s2588_s29 + $0xe0] sm:$0xff]   ;;  %v2484_v32 = vld [vmem:[%s2588_s29 + $0x78] sm:$0xff]   ;;  %v2498_v33 = vld [vmem:[%s2588_s29 + $0xe8] sm:$0xff]  }
  0x1a   : > { %2374 = vmatprep.mubr.msk.bf16.mxu0 %vm634_vm1, %v2471_v6  ;;  %2406 = vmatprep.mubr.msk.bf16.mxu1 %vm634_vm1, %v2487_v13  ;;  %v2499_v34 = vld [vmem:[%s2588_s29 + $0xf0] sm:$0xff]   ;;  %v2500_v35 = vld [vmem:[%s2588_s29 + $0xf8] sm:$0xff]  }
  0x21   : > { %2375 = vmatmul.mubr.msk.bf16.gmra.mxu0 %vm634_vm1, %v2472_v7  ;;  %2407 = vmatmul.mubr.msk.bf16.gmra.mxu1 %vm634_vm1, %v2488_v14 }
  0x22   : > { %2378 = vmatprep.mubr.msk.bf16.mxu0 %vm634_vm1, %v2473_v8  ;;  %2410 = vmatprep.mubr.msk.bf16.mxu1 %vm634_vm1, %v2489_v15 }
  0x29   : > { %2379 = vmatmul.mubr.msk.bf16.gmra.mxu0 %vm634_vm1, %v2474_v9  ;;  %2411 = vmatmul.mubr.msk.bf16.gmra.mxu1 %vm634_vm1, %v2490_v18 }
  0x2a   : > { %2382 = vmatprep.mubr.msk.bf16.mxu0 %vm634_vm1, %v2475_v10  ;;  %2414 = vmatprep.mubr.msk.bf16.mxu1 %vm634_vm1, %v2491_v19 }
  0x31   : > { %2383 = vmatmul.mubr.msk.bf16.gmra.mxu0 %vm634_vm1, %v2476_v16  ;;  %2415 = vmatmul.mubr.msk.bf16.gmra.mxu1 %vm634_vm1, %v2492_v22 }
  0x32   : > { %2386 = vmatprep.mubr.msk.bf16.mxu0 %vm634_vm1, %v2477_v17  ;;  %2418 = vmatprep.mubr.msk.bf16.mxu1 %vm634_vm1, %v2493_v23 }
  0x39   : > { %2387 = vmatmul.mubr.msk.bf16.gmra.mxu0 %vm634_vm1, %v2478_v20  ;;  %2419 = vmatmul.mubr.msk.bf16.gmra.mxu1 %vm634_vm1, %v2494_v26 }
  0x3a   : > { %2390 = vmatprep.mubr.msk.bf16.mxu0 %vm634_vm1, %v2479_v21  ;;  %2422 = vmatprep.mubr.msk.bf16.mxu1 %vm634_vm1, %v2495_v27 }
  0x41   : > { %2391 = vmatmul.mubr.msk.bf16.gmra.mxu0 %vm634_vm1, %v2480_v24  ;;  %2423 = vmatmul.mubr.msk.bf16.gmra.mxu1 %vm634_vm1, %v2496_v30 }
  0x42   : > { %2394 = vmatprep.mubr.msk.bf16.mxu0 %vm634_vm1, %v2481_v25  ;;  %2426 = vmatprep.mubr.msk.bf16.mxu1 %vm634_vm1, %v2497_v31 }
  0x49   : > { %2395 = vmatmul.mubr.msk.bf16.gmra.mxu0 %vm634_vm1, %v2482_v28  ;;  %2427 = vmatmul.mubr.msk.bf16.gmra.mxu1 %vm634_vm1, %v2498_v33 }
  0x4a   : > { %2398 = vmatprep.mubr.msk.bf16.mxu0 %vm634_vm1, %v2483_v29  ;;  %2430 = vmatprep.mubr.msk.bf16.mxu1 %vm634_vm1, %v2499_v34 }
  0x51   : > { %2399 = vmatmul.mubr.msk.bf16.gmra.mxu0 %vm634_vm1, %v2484_v32  ;;  %2431 = vmatmul.mubr.msk.bf16.gmra.mxu1 %vm634_vm1, %v2500_v35 }
  0xd9   : > { %v2372_v36 = vpop.f32.mrf.mxu0  ;;  %v2404_v63 = vpop.f32.mrf.mxu1 }
  0xda   : > { %v1228_v40 = vadd.f32 %v2372_v36, %v2657_v37  ;;  %v2678_v8 = vadd.f32 %v2404_v63, %v2657_v37 }
  0xdb   : > { %v769_v38 = vpop.f32.mrf.mxu0  ;;  %v897_v6 = vpop.f32.mrf.mxu1 }
  0xdc   : > { %v1226_v41 = vadd.f32 %v2657_v37, %v769_v38  ;;  %v1681_v52 = vmul.f32 %v1228_v40, %v1228_v40  ;;  %v2686_v20 = vadd.f32 %v2657_v37, %v897_v6 }
  0xdd   : > { %v2373_v39 = vpop.f32.mrf.mxu0  ;;  %v2405_v13 = vpop.f32.mrf.mxu1 }
  0xde   : > { %v1229_v42 = vadd.f32 %v2373_v39, %v2657_v37  ;;  %v1679_v47 = vmul.f32 %v1226_v41, %v1226_v41  ;;  %v2681_v15 = vadd.f32 %v2405_v13, %v2657_v37 }
  0xdf   : > { %v772_v43 = vpop.f32.mrf.mxu0  ;;  %v900_v21 = vpop.f32.mrf.mxu1 }
  0xe0   : > { %v2146_v44 = vpack.c.bf16 %v1229_v42, %v1228_v40  ;;  %v1227_v45 = vadd.f32 %v2657_v37, %v772_v43  ;;  %v1682_v56 = vmul.f32 %v1229_v42, %v1229_v42  ;;  %v2226_v24 = vpack.c.bf16 %v2681_v15, %v2678_v8 }
  0xe1   : > { %v2376_v46 = vpop.f32.mrf.mxu0  ;;  %v2693_v29 = vadd.f32 %v2657_v37, %v900_v21  ;;  %v2408_v30 = vpop.f32.mrf.mxu1 }
  0xe2   : > { %2298 = vst [vmem:[%s2667_s8 + $0x8] sm:$0xff] %v2146_v44   ;;  %v2141_v48 = vpack.c.bf16 %v1227_v45, %v1226_v41  ;;  %v1610_v49 = vadd.f32 %v1227_v45, %v1226_v41  ;;  %v1680_v50 = vmul.f32 %v1227_v45, %v1227_v45  ;;  %v1232_v59 = vadd.f32 %v2376_v46, %v2657_v37 }
  0xe3   : > { %v785_v51 = vpop.f32.mrf.mxu0  ;;  %2314 = vst [vmem:[%s2667_s8 + $0x88] sm:$0xff] %v2226_v24   ;;  %v2221_v38 = vpack.c.bf16 %v2693_v29, %v2686_v20  ;;  %v913_v39 = vpop.f32.mrf.mxu1 }
  0xe4   : > { %2142 = vst [vmem:[%s2667_s8] sm:$0xff] %v2141_v48   ;;  %v1611_v53 = vadd.f32 %v1610_v49, %v1228_v40  ;;  %v1743_v54 = vadd.f32 %v1680_v50, %v1679_v47  ;;  %v1230_v55 = vadd.f32 %v2657_v37, %v785_v51  ;;  %v1685_v14 = vmul.f32 %v1232_v59, %v1232_v59 }
  0xe5   : > { %v2377_v57 = vpop.f32.mrf.mxu0  ;;  %2313 = vst [vmem:[%s2667_s8 + $0x80] sm:$0xff] %v2221_v38   ;;  %v2409_v46 = vpop.f32.mrf.mxu1 }
  0xe6   : > { %v1744_v58 = vadd.f32 %v1743_v54, %v1681_v52  ;;  %v1612_v60 = vadd.f32 %v1611_v53, %v1229_v42  ;;  %v1233_v61 = vadd.f32 %v2377_v57, %v2657_v37  ;;  %v1683_v1 = vmul.f32 %v1230_v55, %v1230_v55 }
  0xe7   : > { %v788_v62 = vpop.f32.mrf.mxu0  ;;  %v2701_v42 = vadd.f32 %v2408_v30, %v2657_v37  ;;  %v2706_v48 = vadd.f32 %v2409_v46, %v2657_v37  ;;  %v2710_v53 = vadd.f32 %v2657_v37, %v913_v39  ;;  %v916_v54 = vpop.f32.mrf.mxu1 }
  0xe8   : > { %v1613_v0 = vadd.f32 %v1612_v60, %v1230_v55  ;;  %v1745_v2 = vadd.f32 %v1744_v58, %v1682_v56  ;;  %v2156_v3 = vpack.c.bf16 %v1233_v61, %v1232_v59  ;;  %v1231_v4 = vadd.f32 %v2657_v37, %v788_v62 }
  0xe9   : > { %v2380_v5 = vpop.f32.mrf.mxu0  ;;  %v1686_v25 = vmul.f32 %v1233_v61, %v1233_v61  ;;  %v2236_v57 = vpack.c.bf16 %v2706_v48, %v2701_v42  ;;  %v2717_v62 = vadd.f32 %v2657_v37, %v916_v54  ;;  %v2412_v63 = vpop.f32.mrf.mxu1 }
  0xea   : > { %v1746_v7 = vadd.f32 %v1745_v2, %v1683_v1  ;;  %2300 = vst [vmem:[%s2667_s8 + $0x18] sm:$0xff] %v2156_v3   ;;  %v2151_v9 = vpack.c.bf16 %v1231_v4, %v1230_v55  ;;  %v1614_v10 = vadd.f32 %v1613_v0, %v1231_v4  ;;  %v1684_v11 = vmul.f32 %v1231_v4, %v1231_v4 }
  0xeb   : > { %v801_v12 = vpop.f32.mrf.mxu0  ;;  %v1236_v22 = vadd.f32 %v2380_v5, %v2657_v37  ;;  %2316 = vst [vmem:[%s2667_s8 + $0x98] sm:$0xff] %v2236_v57   ;;  %v2231_v6 = vpack.c.bf16 %v2717_v62, %v2710_v53 }
  0xec   : > { %2299 = vst [vmem:[%s2667_s8 + $0x10] sm:$0xff] %v2151_v9   ;;  %v1615_v16 = vadd.f32 %v1614_v10, %v1232_v59  ;;  %v1747_v17 = vadd.f32 %v1746_v7, %v1684_v11  ;;  %v1234_v18 = vadd.f32 %v2657_v37, %v801_v12  ;;  %v929_v7 = vpop.f32.mrf.mxu1  ;;  %v2725_v11 = vadd.f32 %v2412_v63, %v2657_v37 }
  0xed   : > { %v2381_v19 = vpop.f32.mrf.mxu0  ;;  %v1689_v47 = vmul.f32 %v1236_v22, %v1236_v22  ;;  %2315 = vst [vmem:[%s2667_s8 + $0x90] sm:$0xff] %v2231_v6   ;;  %v2734_v24 = vadd.f32 %v2657_v37, %v929_v7 }
  0xee   : > { %v1237_v23 = vadd.f32 %v2381_v19, %v2657_v37  ;;  %v1748_v26 = vadd.f32 %v1747_v17, %v1685_v14  ;;  %v1616_v27 = vadd.f32 %v1615_v16, %v1233_v61  ;;  %v1687_v34 = vmul.f32 %v1234_v18, %v1234_v18  ;;  %v2413_v16 = vpop.f32.mrf.mxu1 }
  0xef   : > { %v804_v28 = vpop.f32.mrf.mxu0 }
  0xf0   : > { %v2166_v31 = vpack.c.bf16 %v1237_v23, %v1236_v22  ;;  %v1235_v32 = vadd.f32 %v2657_v37, %v804_v28  ;;  %v1617_v33 = vadd.f32 %v1616_v27, %v1234_v18  ;;  %v1749_v35 = vadd.f32 %v1748_v26, %v1686_v25  ;;  %v932_v25 = vpop.f32.mrf.mxu1 }
  0xf1   : > { %v2384_v36 = vpop.f32.mrf.mxu0  ;;  %v1690_v58 = vmul.f32 %v1237_v23, %v1237_v23 }
  0xf2   : > { %2302 = vst [vmem:[%s2667_s8 + $0x28] sm:$0xff] %v2166_v31   ;;  %v2161_v40 = vpack.c.bf16 %v1235_v32, %v1234_v18  ;;  %v1688_v41 = vmul.f32 %v1235_v32, %v1235_v32  ;;  %v1750_v43 = vadd.f32 %v1749_v35, %v1687_v34  ;;  %v1618_v44 = vadd.f32 %v1617_v33, %v1235_v32  ;;  %v2416_v35 = vpop.f32.mrf.mxu1 }
  0xf3   : > { %v817_v45 = vpop.f32.mrf.mxu0  ;;  %v1240_v55 = vadd.f32 %v2384_v36, %v2657_v37  ;;  %v2730_v18 = vadd.f32 %v2413_v16, %v2657_v37  ;;  %v2741_v34 = vadd.f32 %v2657_v37, %v932_v25 }
  0xf4   : > { %2301 = vst [vmem:[%s2667_s8 + $0x20] sm:$0xff] %v2161_v40   ;;  %v1619_v49 = vadd.f32 %v1618_v44, %v1236_v22  ;;  %v1751_v50 = vadd.f32 %v1750_v43, %v1688_v41  ;;  %v1238_v51 = vadd.f32 %v2657_v37, %v817_v45  ;;  %v945_v45 = vpop.f32.mrf.mxu1 }
  0xf5   : > { %v2385_v52 = vpop.f32.mrf.mxu0  ;;  %v1693_v17 = vmul.f32 %v1240_v55, %v1240_v55  ;;  %v2246_v28 = vpack.c.bf16 %v2730_v18, %v2725_v11  ;;  %v2241_v44 = vpack.c.bf16 %v2741_v34, %v2734_v24 }
  0xf6   : > { %v1241_v56 = vadd.f32 %v2385_v52, %v2657_v37  ;;  %v1752_v59 = vadd.f32 %v1751_v50, %v1689_v47  ;;  %v1620_v60 = vadd.f32 %v1619_v49, %v1237_v23  ;;  %v1691_v3 = vmul.f32 %v1238_v51, %v1238_v51  ;;  %v2417_v54 = vpop.f32.mrf.mxu1 }
  0xf7   : > { %v820_v61 = vpop.f32.mrf.mxu0  ;;  %2318 = vst [vmem:[%s2667_s8 + $0xa8] sm:$0xff] %v2246_v28   ;;  %v2749_v49 = vadd.f32 %v2416_v35, %v2657_v37  ;;  %2317 = vst [vmem:[%s2667_s8 + $0xa0] sm:$0xff] %v2241_v44  }
  0xf8   : > { %v2176_v0 = vpack.c.bf16 %v1241_v56, %v1240_v55  ;;  %v1239_v1 = vadd.f32 %v2657_v37, %v820_v61  ;;  %v1621_v2 = vadd.f32 %v1620_v60, %v1238_v51  ;;  %v1753_v4 = vadd.f32 %v1752_v59, %v1690_v58  ;;  %v948_v63 = vpop.f32.mrf.mxu1 }
  0xf9   : > { %v2388_v5 = vpop.f32.mrf.mxu0  ;;  %v1694_v30 = vmul.f32 %v1241_v56, %v1241_v56  ;;  %v2758_v61 = vadd.f32 %v2657_v37, %v945_v45  ;;  %v2765_v7 = vadd.f32 %v2657_v37, %v948_v63 }
  0xfa   : > { %2304 = vst [vmem:[%s2667_s8 + $0x38] sm:$0xff] %v2176_v0   ;;  %v2171_v9 = vpack.c.bf16 %v1239_v1, %v1238_v51  ;;  %v1692_v10 = vmul.f32 %v1239_v1, %v1239_v1  ;;  %v1754_v12 = vadd.f32 %v1753_v4, %v1691_v3  ;;  %v1622_v13 = vadd.f32 %v1621_v2, %v1239_v1 }
  0xfb   : > { %v833_v14 = vpop.f32.mrf.mxu0  ;;  %v1244_v26 = vadd.f32 %v2388_v5, %v2657_v37 }
  0xfc   : > { %2303 = vst [vmem:[%s2667_s8 + $0x30] sm:$0xff] %v2171_v9   ;;  %v1623_v19 = vadd.f32 %v1622_v13, %v1240_v55  ;;  %v1755_v21 = vadd.f32 %v1754_v12, %v1692_v10  ;;  %v1242_v22 = vadd.f32 %v2657_v37, %v833_v14  ;;  %v2420_v9 = vpop.f32.mrf.mxu1 }
  0xfd   : > { %v2389_v23 = vpop.f32.mrf.mxu0  ;;  %v1697_v55 = vmul.f32 %v1244_v26, %v1244_v26  ;;  %v2773_v25 = vadd.f32 %v2420_v9, %v2657_v37 }
  0xfe   : > { %v1245_v27 = vadd.f32 %v2389_v23, %v2657_v37  ;;  %v1756_v31 = vadd.f32 %v1755_v21, %v1693_v17  ;;  %v1624_v32 = vadd.f32 %v1623_v19, %v1241_v56  ;;  %v1695_v40 = vmul.f32 %v1242_v22, %v1242_v22  ;;  %v961_v21 = vpop.f32.mrf.mxu1 }
  0xff   : > { %v836_v33 = vpop.f32.mrf.mxu0  ;;  %v2754_v56 = vadd.f32 %v2417_v54, %v2657_v37  ;;  %v2251_v19 = vpack.c.bf16 %v2765_v7, %v2758_v61 }
 0x100   : > { %v2186_v36 = vpack.c.bf16 %v1245_v27, %v1244_v26  ;;  %v1243_v38 = vadd.f32 %v2657_v37, %v836_v33  ;;  %v1625_v39 = vadd.f32 %v1624_v32, %v1242_v22  ;;  %v1757_v41 = vadd.f32 %v1756_v31, %v1694_v30  ;;  %v2421_v30 = vpop.f32.mrf.mxu1 }
 0x101   : > { %v2392_v43 = vpop.f32.mrf.mxu0  ;;  %v2256_v2 = vpack.c.bf16 %v2754_v56, %v2749_v49  ;;  %v1698_v3 = vmul.f32 %v1245_v27, %v1245_v27  ;;  %2319 = vst [vmem:[%s2667_s8 + $0xb0] sm:$0xff] %v2251_v19   ;;  %v2778_v32 = vadd.f32 %v2421_v30, %v2657_v37 }
 0x102   : > { %2306 = vst [vmem:[%s2667_s8 + $0x48] sm:$0xff] %v2186_v36   ;;  %v2181_v46 = vpack.c.bf16 %v1243_v38, %v1242_v22  ;;  %v1696_v47 = vmul.f32 %v1243_v38, %v1243_v38  ;;  %v1758_v50 = vadd.f32 %v1757_v41, %v1695_v40  ;;  %v1626_v51 = vadd.f32 %v1625_v39, %v1243_v38  ;;  %v964_v40 = vpop.f32.mrf.mxu1 }
 0x103   : > { %v849_v52 = vpop.f32.mrf.mxu0  ;;  %v1248_v0 = vadd.f32 %v2392_v43, %v2657_v37  ;;  %2320 = vst [vmem:[%s2667_s8 + $0xb8] sm:$0xff] %v2256_v2   ;;  %v2782_v39 = vadd.f32 %v2657_v37, %v961_v21  ;;  %v2266_v44 = vpack.c.bf16 %v2778_v32, %v2773_v25 }
 0x104   : > { %2305 = vst [vmem:[%s2667_s8 + $0x40] sm:$0xff] %v2181_v46   ;;  %v1627_v57 = vadd.f32 %v1626_v51, %v1244_v26  ;;  %v1759_v58 = vadd.f32 %v1758_v50, %v1696_v47  ;;  %v1246_v59 = vadd.f32 %v2657_v37, %v849_v52  ;;  %v2789_v51 = vadd.f32 %v2657_v37, %v964_v40  ;;  %v2424_v52 = vpop.f32.mrf.mxu1 }
 0x105   : > { %v2393_v60 = vpop.f32.mrf.mxu0  ;;  %v1701_v31 = vmul.f32 %v1248_v0, %v1248_v0  ;;  %2322 = vst [vmem:[%s2667_s8 + $0xc8] sm:$0xff] %v2266_v44  }
 0x106   : > { %v1249_v1 = vadd.f32 %v2393_v60, %v2657_v37  ;;  %v1760_v4 = vadd.f32 %v1759_v58, %v1697_v55  ;;  %v1628_v5 = vadd.f32 %v1627_v57, %v1245_v27  ;;  %v1699_v14 = vmul.f32 %v1246_v59, %v1246_v59 }
 0x107   : > { %v852_v6 = vpop.f32.mrf.mxu0  ;;  %v2261_v63 = vpack.c.bf16 %v2789_v51, %v2782_v39 }
 0x108   : > { %v2196_v10 = vpack.c.bf16 %v1249_v1, %v1248_v0  ;;  %v1247_v12 = vadd.f32 %v2657_v37, %v852_v6  ;;  %v1629_v13 = vadd.f32 %v1628_v5, %v1246_v59  ;;  %v1761_v16 = vadd.f32 %v1760_v4, %v1698_v3 }
 0x109   : > { %v2396_v17 = vpop.f32.mrf.mxu0  ;;  %v1702_v45 = vmul.f32 %v1249_v1, %v1249_v1  ;;  %v2797_v3 = vadd.f32 %v2424_v52, %v2657_v37  ;;  %2321 = vst [vmem:[%s2667_s8 + $0xc0] sm:$0xff] %v2261_v63  }
 0x10a   : > { %2308 = vst [vmem:[%s2667_s8 + $0x58] sm:$0xff] %v2196_v10   ;;  %v2191_v22 = vpack.c.bf16 %v1247_v12, %v1246_v59  ;;  %v1700_v23 = vmul.f32 %v1247_v12, %v1247_v12  ;;  %v1762_v26 = vadd.f32 %v1761_v16, %v1699_v14  ;;  %v1630_v27 = vadd.f32 %v1629_v13, %v1247_v12 }
 0x10b   : > { %v865_v28 = vpop.f32.mrf.mxu0  ;;  %v1252_v41 = vadd.f32 %v2396_v17, %v2657_v37 }
 0x10c   : > { %2307 = vst [vmem:[%s2667_s8 + $0x50] sm:$0xff] %v2191_v22   ;;  %v1631_v33 = vadd.f32 %v1630_v27, %v1248_v0  ;;  %v1763_v35 = vadd.f32 %v1762_v26, %v1700_v23  ;;  %v1250_v36 = vadd.f32 %v2657_v37, %v865_v28  ;;  %v977_v0 = vpop.f32.mrf.mxu1 }
 0x10d   : > { %v2397_v38 = vpop.f32.mrf.mxu0  ;;  %v1705_v10 = vmul.f32 %v1252_v41, %v1252_v41  ;;  %v2806_v19 = vadd.f32 %v2657_v37, %v977_v0 }
 0x10e   : > { %v1253_v43 = vadd.f32 %v2397_v38, %v2657_v37  ;;  %v1764_v46 = vadd.f32 %v1763_v35, %v1701_v31  ;;  %v1632_v47 = vadd.f32 %v1631_v33, %v1249_v1  ;;  %v1703_v58 = vmul.f32 %v1250_v36, %v1250_v36  ;;  %v2425_v9 = vpop.f32.mrf.mxu1 }
 0x10f   : > { %v868_v50 = vpop.f32.mrf.mxu0  ;;  %v2802_v12 = vadd.f32 %v2425_v9, %v2657_v37 }
 0x110   : > { %v2206_v54 = vpack.c.bf16 %v1253_v43, %v1252_v41  ;;  %v1251_v55 = vadd.f32 %v2657_v37, %v868_v50  ;;  %v1633_v57 = vadd.f32 %v1632_v47, %v1250_v36  ;;  %v1765_v59 = vadd.f32 %v1764_v46, %v1702_v45  ;;  %v980_v21 = vpop.f32.mrf.mxu1 }
 0x111   : > { %v2400_v60 = vpop.f32.mrf.mxu0  ;;  %v2276_v26 = vpack.c.bf16 %v2802_v12, %v2797_v3  ;;  %v1706_v27 = vmul.f32 %v1253_v43, %v1253_v43  ;;  %v2813_v33 = vadd.f32 %v2657_v37, %v980_v21 }
 0x112   : > { %2310 = vst [vmem:[%s2667_s8 + $0x68] sm:$0xff] %v2206_v54   ;;  %v2201_v1 = vpack.c.bf16 %v1251_v55, %v1250_v36  ;;  %v1704_v2 = vmul.f32 %v1251_v55, %v1251_v55  ;;  %v1766_v4 = vadd.f32 %v1765_v59, %v1703_v58  ;;  %v1634_v5 = vadd.f32 %v1633_v57, %v1251_v55  ;;  %v2428_v35 = vpop.f32.mrf.mxu1 }
 0x113   : > { %v881_v6 = vpop.f32.mrf.mxu0  ;;  %v1256_v22 = vadd.f32 %v2400_v60, %v2657_v37  ;;  %2324 = vst [vmem:[%s2667_s8 + $0xd8] sm:$0xff] %v2276_v26   ;;  %v2271_v45 = vpack.c.bf16 %v2813_v33, %v2806_v19  ;;  %v2821_v50 = vadd.f32 %v2428_v35, %v2657_v37 }
 0x114   : > { %2309 = vst [vmem:[%s2667_s8 + $0x60] sm:$0xff] %v2201_v1   ;;  %v1635_v13 = vadd.f32 %v1634_v5, %v1252_v41  ;;  %v1767_v14 = vadd.f32 %v1766_v4, %v1704_v2  ;;  %v1254_v16 = vadd.f32 %v2657_v37, %v881_v6  ;;  %v993_v46 = vpop.f32.mrf.mxu1 }
 0x115   : > { %v2401_v17 = vpop.f32.mrf.mxu0  ;;  %2323 = vst [vmem:[%s2667_s8 + $0xd0] sm:$0xff] %v2271_v45   ;;  %v2826_v57 = vadd.f32 %v2657_v37, %v993_v46  ;;  %v1709_v59 = vmul.f32 %v1256_v22, %v1256_v22  ;;  %v1715_v46 = vmul.f32 %v2710_v53, %v2710_v53 }
 0x116   : > { %v1257_v23 = vadd.f32 %v2401_v17, %v2657_v37  ;;  %v1768_v28 = vadd.f32 %v1767_v14, %v1705_v10  ;;  %v1636_v30 = vadd.f32 %v1635_v13, %v1253_v43  ;;  %v1707_v41 = vmul.f32 %v1254_v16, %v1254_v16  ;;  %v2429_v55 = vpop.f32.mrf.mxu1 }
 0x117   : > { %v884_v31 = vpop.f32.mrf.mxu0  ;;  %v2829_v58 = vadd.f32 %v2429_v55, %v2657_v37  ;;  %v1711_v13 = vmul.f32 %v2686_v20, %v2686_v20 }
 0x118   : > { %v2216_v36 = vpack.c.bf16 %v1257_v23, %v1256_v22  ;;  %v1255_v38 = vadd.f32 %v2657_v37, %v884_v31  ;;  %v1637_v40 = vadd.f32 %v1636_v30, %v1254_v16  ;;  %v1769_v44 = vadd.f32 %v1768_v28, %v1706_v27  ;;  %v996_v0 = vpop.f32.mrf.mxu1 }
 0x119   : > { %v2286_v1 = vpack.c.bf16 %v2829_v58, %v2821_v50  ;;  %v2834_v2 = vadd.f32 %v2657_v37, %v996_v0  ;;  %v1710_v4 = vmul.f32 %v1257_v23, %v1257_v23  ;;  %v1713_v30 = vmul.f32 %v2678_v8, %v2678_v8 }
 0x11a   : > { %2312 = vst [vmem:[%s2667_s8 + $0x78] sm:$0xff] %v2216_v36   ;;  %v2211_v43 = vpack.c.bf16 %v1255_v38, %v1254_v16  ;;  %v1708_v47 = vmul.f32 %v1255_v38, %v1255_v38  ;;  %v1770_v52 = vadd.f32 %v1769_v44, %v1707_v41  ;;  %v1638_v54 = vadd.f32 %v1637_v40, %v1255_v38  ;;  %v2432_v9 = vpop.f32.mrf.mxu1 }
 0x11b   : > { %2326 = vst [vmem:[%s2667_s8 + $0xe8] sm:$0xff] %v2286_v1   ;;  %v2281_v10 = vpack.c.bf16 %v2834_v2, %v2826_v57  ;;  %v2844_v21 = vadd.f32 %v2432_v9, %v2657_v37  ;;  %v1714_v40 = vmul.f32 %v2681_v15, %v2681_v15  ;;  %v1719_v0 = vmul.f32 %v2734_v24, %v2734_v24 }
 0x11c   : > { %2311 = vst [vmem:[%s2667_s8 + $0x70] sm:$0xff] %v2211_v43   ;;  %v1639_v60 = vadd.f32 %v1638_v54, %v1256_v22  ;;  %v1771_v63 = vadd.f32 %v1770_v52, %v1708_v47  ;;  %v1009_v17 = vpop.f32.mrf.mxu1  ;;  %v1716_v52 = vmul.f32 %v2717_v62, %v2717_v62 }
 0x11d   : > { %2325 = vst [vmem:[%s2667_s8 + $0xe0] sm:$0xff] %v2281_v10   ;;  %v2850_v28 = vadd.f32 %v2657_v37, %v1009_v17 }
 0x11e   : > { %v1772_v5 = vadd.f32 %v1771_v63, %v1709_v59  ;;  %v1640_v6 = vadd.f32 %v1639_v60, %v1257_v23  ;;  %v1712_v23 = vmul.f32 %v2693_v29, %v2693_v29  ;;  %v2433_v27 = vpop.f32.mrf.mxu1  ;;  %v1718_v59 = vmul.f32 %v2706_v48, %v2706_v48 }
 0x120   : > { %v1641_v14 = vadd.f32 %v1640_v6, %v2686_v20  ;;  %v1773_v16 = vadd.f32 %v1772_v5, %v1710_v4  ;;  %v2853_v20 = vadd.f32 %v2433_v27, %v2657_v37  ;;  %v1012_v36 = vpop.f32.mrf.mxu1  ;;  %v1720_v5 = vmul.f32 %v2741_v34, %v2741_v34 }
 0x122   : > { %v1642_v22 = vadd.f32 %v1641_v14, %v2693_v29  ;;  %v1774_v26 = vadd.f32 %v1773_v16, %v1711_v13  ;;  %v2296_v38 = vpack.c.bf16 %v2853_v20, %v2844_v21  ;;  %v2861_v29 = vadd.f32 %v2657_v37, %v1012_v36 }
 0x123   : > { %v1723_v14 = vmul.f32 %v2758_v61, %v2758_v61 }
 0x124   : > { %v1643_v31 = vadd.f32 %v1642_v22, %v2678_v8  ;;  %v1775_v35 = vadd.f32 %v1774_v26, %v1712_v23  ;;  %2328 = vst [vmem:[%s2667_s8 + $0xf8] sm:$0xff] %v2296_v38   ;;  %v2291_v45 = vpack.c.bf16 %v2861_v29, %v2850_v28  ;;  %v1724_v22 = vmul.f32 %v2765_v7, %v2765_v7 }
 0x125   : > { %v1728_v38 = vmul.f32 %v2789_v51, %v2789_v51 }
 0x126   : > { %v1776_v41 = vadd.f32 %v1775_v35, %v1713_v30  ;;  %v1644_v44 = vadd.f32 %v1643_v31, %v2681_v15  ;;  %2327 = vst [vmem:[%s2667_s8 + $0xf0] sm:$0xff] %v2291_v45   ;;  %v1717_v15 = vmul.f32 %v2701_v42, %v2701_v42  ;;  %v1727_v31 = vmul.f32 %v2782_v39, %v2782_v39 }
 0x128   : > { %v1645_v8 = vadd.f32 %v1644_v44, %v2710_v53  ;;  %v1777_v43 = vadd.f32 %v1776_v41, %v1714_v40 }
 0x12a   : > { %v1778_v47 = vadd.f32 %v1777_v43, %v1715_v46  ;;  %v1646_v37 = vadd.f32 %v1645_v8, %v2717_v62  ;;  %v1731_v8 = vmul.f32 %v2806_v19, %v2806_v19 }
 0x12c   : > { %v1647_v54 = vadd.f32 %v1646_v37, %v2701_v42  ;;  %v1779_v55 = vadd.f32 %v1778_v47, %v1716_v52  ;;  %v1721_v42 = vmul.f32 %v2725_v11, %v2725_v11  ;;  %v1732_v47 = vmul.f32 %v2813_v33, %v2813_v33 }
 0x12e   : > { %v1780_v60 = vadd.f32 %v1779_v55, %v1717_v15  ;;  %v1648_v53 = vadd.f32 %v1647_v54, %v2706_v48  ;;  %v1722_v48 = vmul.f32 %v2730_v18, %v2730_v18  ;;  %v1735_v55 = vmul.f32 %v2826_v57, %v2826_v57 }
 0x130   : > { %v1649_v63 = vadd.f32 %v1648_v53, %v2734_v24  ;;  %v1781_v1 = vadd.f32 %v1780_v60, %v1718_v59  ;;  %v1736_v53 = vmul.f32 %v2834_v2, %v2834_v2 }
 0x132   : > { %v1782_v4 = vadd.f32 %v1781_v1, %v1719_v0  ;;  %v1650_v62 = vadd.f32 %v1649_v63, %v2741_v34 }
 0x134   : > { %v1651_v6 = vadd.f32 %v1650_v62, %v2725_v11  ;;  %v1783_v9 = vadd.f32 %v1782_v4, %v1720_v5  ;;  %v1725_v11 = vmul.f32 %v2749_v49, %v2749_v49  ;;  %v1739_v62 = vmul.f32 %v2850_v28, %v2850_v28 }
 0x136   : > { %v1784_v10 = vadd.f32 %v1783_v9, %v1721_v42  ;;  %v1652_v13 = vadd.f32 %v1651_v6, %v2730_v18  ;;  %v1726_v18 = vmul.f32 %v2754_v56, %v2754_v56  ;;  %v1741_v6 = vmul.f32 %v2844_v21, %v2844_v21 }
 0x138   : > { %v1653_v24 = vadd.f32 %v1652_v13, %v2758_v61  ;;  %v1785_v16 = vadd.f32 %v1784_v10, %v1722_v48 }
 0x13a   : > { %v1786_v17 = vadd.f32 %v1785_v16, %v1723_v14  ;;  %v1654_v34 = vadd.f32 %v1653_v24, %v2765_v7 }
 0x13c   : > { %v1655_v23 = vadd.f32 %v1654_v34, %v2749_v49  ;;  %v1787_v26 = vadd.f32 %v1786_v17, %v1724_v22  ;;  %v1729_v49 = vmul.f32 %v2773_v25, %v2773_v25 }
 0x13e   : > { %v1788_v27 = vadd.f32 %v1787_v26, %v1725_v11  ;;  %v1656_v30 = vadd.f32 %v1655_v23, %v2754_v56  ;;  %v1730_v56 = vmul.f32 %v2778_v32, %v2778_v32 }
 0x140   : > { %v1657_v61 = vadd.f32 %v1656_v30, %v2782_v39  ;;  %v1789_v35 = vadd.f32 %v1788_v27, %v1726_v18 }
 0x142   : > { %v1790_v36 = vadd.f32 %v1789_v35, %v1727_v31  ;;  %v1658_v7 = vadd.f32 %v1657_v61, %v2789_v51 }
 0x144   : > { %v1659_v40 = vadd.f32 %v1658_v7, %v2773_v25  ;;  %v1791_v41 = vadd.f32 %v1790_v36, %v1728_v38  ;;  %v1733_v25 = vmul.f32 %v2797_v3, %v2797_v3 }
 0x146   : > { %v1792_v44 = vadd.f32 %v1791_v41, %v1729_v49  ;;  %v1660_v45 = vadd.f32 %v1659_v40, %v2778_v32  ;;  %v1734_v32 = vmul.f32 %v2802_v12, %v2802_v12 }
 0x148   : > { %v1661_v39 = vadd.f32 %v1660_v45, %v2806_v19  ;;  %v1793_v46 = vadd.f32 %v1792_v44, %v1730_v56 }
 0x14a   : > { %v1794_v43 = vadd.f32 %v1793_v46, %v1731_v8  ;;  %v1662_v51 = vadd.f32 %v1661_v39, %v2813_v33 }
 0x14c   : > { %v1663_v37 = vadd.f32 %v1662_v51, %v2797_v3  ;;  %v1795_v52 = vadd.f32 %v1794_v43, %v1732_v47  ;;  %v1737_v3 = vmul.f32 %v2821_v50, %v2821_v50 }
 0x14e   : > { %v1796_v15 = vadd.f32 %v1795_v52, %v1733_v25  ;;  %v1664_v54 = vadd.f32 %v1663_v37, %v2802_v12  ;;  %v1738_v12 = vmul.f32 %v2829_v58, %v2829_v58 }
 0x150   : > { %v1665_v19 = vadd.f32 %v1664_v54, %v2826_v57  ;;  %v1797_v59 = vadd.f32 %v1796_v15, %v1734_v32 }
 0x152   : > { %v1798_v60 = vadd.f32 %v1797_v59, %v1735_v55  ;;  %v1666_v33 = vadd.f32 %v1665_v19, %v2834_v2 }
 0x154   : > { %v1667_v63 = vadd.f32 %v1666_v33, %v2821_v50  ;;  %v1799_v0 = vadd.f32 %v1798_v60, %v1736_v53  ;;  %v1740_v50 = vmul.f32 %v2861_v29, %v2861_v29 }
 0x156   : > { %v1800_v1 = vadd.f32 %v1799_v0, %v1737_v3  ;;  %v1668_v57 = vadd.f32 %v1667_v63, %v2829_v58  ;;  %v1742_v58 = vmul.f32 %v2853_v20, %v2853_v20 }
 0x158   : > { %v1669_v4 = vadd.f32 %v1668_v57, %v2850_v28  ;;  %v1801_v5 = vadd.f32 %v1800_v1, %v1738_v12 }
 0x15a   : > { %v1802_v2 = vadd.f32 %v1801_v5, %v1739_v62  ;;  %v1670_v42 = vadd.f32 %v1669_v4, %v2861_v29 }
 0x15c   : > { %v1671_v9 = vadd.f32 %v1670_v42, %v2844_v21  ;;  %v1803_v48 = vadd.f32 %v1802_v2, %v1740_v50 }
 0x15e   : > { %v1672_v10 = vadd.f32 %v1671_v9, %v2853_v20  ;;  %v1804_v28 = vadd.f32 %v1803_v48, %v1741_v6 }
 0x160   : > { %v1673_v13 = vrot.slane %v1672_v10, 4  ;;  %v1805_v24 = vadd.f32 %v1804_v28, %v1742_v58 }
 0x162   : > { %v1674_v14 = vadd.f32 %v1673_v13, %v1672_v10  ;;  %v1806_v16 = vrot.slane %v1805_v24, 4 }
 0x164   : > { %v1675_v17 = vrot.slane %v1674_v14, 2  ;;  %v1807_v34 = vadd.f32 %v1806_v16, %v1805_v24 }
 0x166   : > { %v1676_v29 = vadd.f32 %v1675_v17, %v1674_v14  ;;  %v1808_v22 = vrot.slane %v1807_v34, 2 }
 0x168   : > { %v1677_v11 = vrot.slane %v1676_v29, 1  ;;  %v1809_v23 = vadd.f32 %v1808_v22, %v1807_v34 }
 0x16a   : > { %v1810_v21 = vrot.slane %v1809_v23, 1  ;;  %v1678_v20 = vadd.f32 %v1677_v11, %v1676_v29 }
 0x16c   : > { %v1811_v26 = vadd.f32 %v1810_v21, %v1809_v23 }
 0x16e   : > { %v1813_v18 = vsel %vm1812_vm2, %v1678_v20, %v1811_v26 }
 0x16f   : > { %1814 = vst [vmem:[%s256_s12] sm:$0x3] %v1813_v18 }
 0x170 PF: > { %s15_s17 = sadd.s32 1, %s2523_s17   ;;  %s2973_s15 = smov %s2519_s16 }
 0x171   : > { %p12_p6 = scmp.ge.s32.totalorder %s15_s17, 6   ;;  %s2974_s16 = smov %s2976_s18 }
 0x173   :  { %14 = sbr.rel (!%p12_p6) target bundleno = 2 (0x2), region = 85 }

</bundles_post_ra>
